<compile_context>
chip_gen: v5e
topology: v5e:2x2
jax: 0.10.0
libtpu: 0.0.40
codegen_flags: <defaults>
</compile_context>

<pallas_src>
import functools
import math

import numpy as np

import jax
import jax.numpy as jnp
from jax.experimental import pallas as pl
from jax.experimental.pallas import tpu as pltpu

_ROW_TILE = 256    # rows of flattened conv output per f32 accumulator tile
_EXP_TILE = 1024   # row chunk for the dj-expansion copies (bounds op size)
_PAD_ROWS = 8      # zero rows appended to each flattened activation buffer;
                   # shifted reads go at most 2 rows past the valid region.


# ---------------------------------------------------------------------------
# Kernel 1: fused conv1..conv4 (+bias+ReLU), one image per grid step.
# ---------------------------------------------------------------------------
def _conv_stack_kernel(x_ref, w1_ref, b1_ref, w2_ref, b2_ref, w3_ref, b3_ref,
                       w4_ref, b4_ref, o_ref, act1_ref, act2_ref, act3_ref,
                       exp_ref, *, row_w):
    """Activations are row-flattened (rows*row_w, C) f32 buffers.

    A KxK stride-1 conv is done as: (1) a dj-expansion pass writing
    exp[r, dj*Cin + c] = src[r + dj, c]; (2) per row tile, K matmuls of
    width K*Cin, one per tap-row di, read at sublane offset di*row_w.
    Columns >= valid_width of each row-group mix data across row boundaries
    ("garbage") but stay finite and are neutralized by zero fc-weight rows.
    """

    def layer(src_ref, w_ref, b_ref, ksize, m_valid, dst_ref):
        cin = src_ref.shape[-1]
        cout = w_ref.shape[-1]
        kx = ksize * cin
        bias = b_ref[...]                                     # (1, cout) f32

        # dj-expansion: exp[r, dj*cin + c] = src[r + dj, c]
        m_read = m_valid + (ksize - 1) * row_w
        for dj in range(ksize):
            for e0 in range(0, m_read, _EXP_TILE):
                te = min(_EXP_TILE, m_read - e0)
                exp_ref[pl.ds(e0, te), pl.ds(dj * cin, cin)] = (
                    src_ref[pl.ds(e0 + dj, te), :])

        # conv: per row tile, ksize fused matmuls of K = ksize*cin
        for r0 in range(0, m_valid, _ROW_TILE):
            tm = min(_ROW_TILE, m_valid - r0)
            acc = jnp.zeros((tm, cout), jnp.float32)
            for di in range(ksize):
                slab = exp_ref[pl.ds(r0 + di * row_w, tm), pl.ds(0, kx)]
                acc = acc + jnp.dot(slab.astype(jnp.bfloat16), w_ref[di],
                                    preferred_element_type=jnp.float32)
            y = jnp.maximum(acc + bias, 0.0)                  # bias+ReLU, f32
            dst_ref[pl.ds(r0, tm), :] = y.astype(dst_ref.dtype)

        pad = dst_ref.shape[0] - m_valid
        if pad:  # keep the overrun-read rows finite and deterministic
            dst_ref[pl.ds(m_valid, pad), :] = jnp.zeros((pad, cout),
                                                        dst_ref.dtype)

    m1 = act1_ref.shape[0] - _PAD_ROWS
    m2 = act2_ref.shape[0] - _PAD_ROWS
    m3 = act3_ref.shape[0] - _PAD_ROWS
    layer(x_ref,    w1_ref, b1_ref, 2, m1, act1_ref)   # conv1 as 2x2 on s2d
    layer(act1_ref, w2_ref, b2_ref, 3, m2, act2_ref)
    layer(act2_ref, w3_ref, b3_ref, 3, m3, act3_ref)
    layer(act3_ref, w4_ref, b4_ref, 3, o_ref.shape[0], o_ref)


def conv_stack(xs_flat, w1, b1, w2, b2, w3, b3, w4, b4, *, row_w, heights):
    """xs_flat: (N, Hs*Ws + pad, 4*Cin) f32.  Returns (N, H4*Ws, 32) bf16."""
    n, m0p, c0 = xs_flat.shape
    cout = w1.shape[-1]
    m0 = (heights[0] + 1) * row_w
    m1, m2, m3, m4 = (hh * row_w for hh in heights)
    exp_cols = max(2 * c0, 3 * cout)

    flops = int(2 * n * (m1 * 4 * c0 * cout + 9 * (m2 + m3 + m4) * cout * cout))
    bytes_accessed = int(
        xs_flat.size * xs_flat.dtype.itemsize
        + sum(a.size * a.dtype.itemsize for a in (w1, w2, w3, w4, b1, b2, b3, b4))
        + n * m4 * cout * 2)

    w_map = lambda i: (0, 0, 0)
    b_map = lambda i: (0, 0)
    return pl.pallas_call(
        functools.partial(_conv_stack_kernel, row_w=row_w),
        out_shape=jax.ShapeDtypeStruct((n, m4, cout), jnp.bfloat16),
        grid=(n,),
        in_specs=[
            pl.BlockSpec((None, m0p, c0), lambda i: (i, 0, 0)),
            pl.BlockSpec(w1.shape, w_map), pl.BlockSpec(b1.shape, b_map),
            pl.BlockSpec(w2.shape, w_map), pl.BlockSpec(b2.shape, b_map),
            pl.BlockSpec(w3.shape, w_map), pl.BlockSpec(b3.shape, b_map),
            pl.BlockSpec(w4.shape, w_map), pl.BlockSpec(b4.shape, b_map),
        ],
        out_specs=pl.BlockSpec((None, m4, cout), lambda i: (i, 0, 0)),
        scratch_shapes=[
            pltpu.VMEM((m1 + _PAD_ROWS, cout), jnp.float32),
            pltpu.VMEM((m2 + _PAD_ROWS, cout), jnp.float32),
            pltpu.VMEM((m3 + _PAD_ROWS, cout), jnp.float32),
            pltpu.VMEM((m0, exp_cols), jnp.float32),   # shared dj-expansion buf
        ],
        compiler_params=pltpu.CompilerParams(
            dimension_semantics=("parallel",)),
        cost_estimate=pl.CostEstimate(
            flops=flops, transcendentals=0, bytes_accessed=bytes_accessed),
    )(xs_flat, w1, b1, w2, b2, w3, b3, w4, b4)


# ---------------------------------------------------------------------------
# Kernel 2: head = Linear -> LayerNorm -> tanh, tiled over batch rows.
# ---------------------------------------------------------------------------
def _head_kernel(h_ref, w_ref, b_ref, g_ref, beta_ref, o_ref):
    y = jnp.dot(h_ref[...], w_ref[...], preferred_element_type=jnp.float32)
    y = y + b_ref[...]
    mean = jnp.mean(y, axis=-1, keepdims=True)
    var = jnp.mean(jnp.square(y - mean), axis=-1, keepdims=True)
    yn = (y - mean) * jax.lax.rsqrt(var + 1e-5)          # torch LN: eps=1e-5
    o_ref[...] = jnp.tanh(yn * g_ref[...] + beta_ref[...])


def head_linear_ln_tanh(h, w, b, gamma, beta):
    n, k = h.shape
    f = w.shape[1]
    h = h.astype(jnp.bfloat16)

    # Batch-row tile from a VMEM budget that is conservative for v7x's
    # 64 MiB physical VMEM: 2x (double-buffered) bf16 h blocks + f32 out
    # blocks + the (possibly double-buffered) resident bf16 weight.
    budget = 36 << 20
    resident = 2 * k * f * 2 + 6 * f * 4
    per_row = 2 * (k * 2) + 2 * (f * 4)
    tb = max(8, min(512, (budget - resident) // per_row) // 8 * 8)
    n8 = ((n + 7) // 8) * 8
    if n8 <= tb:
        # Small batch: split into two grid steps when possible so both v7x
        # TensorCores get work; otherwise a single padded step.
        tb = ((n8 // 2 + 7) // 8) * 8 if n8 >= 16 else n8
    n_pad = ((n + tb - 1) // tb) * tb
    hp = h if n_pad == n else jnp.pad(h, ((0, n_pad - n), (0, 0)))

    flops = int(2 * n_pad * k * f + 8 * n_pad * f)
    bytes_accessed = int(hp.size * hp.dtype.itemsize
                         + w.size * w.dtype.itemsize + n_pad * f * 4)
    out = pl.pallas_call(
        _head_kernel,
        out_shape=jax.ShapeDtypeStruct((n_pad, f), jnp.float32),
        grid=(n_pad // tb,),
        in_specs=[
            pl.BlockSpec((tb, k), lambda i: (i, 0)),
            pl.BlockSpec((k, f), lambda i: (0, 0)),      # weight stays resident
            pl.BlockSpec((1, f), lambda i: (0, 0)),
            pl.BlockSpec((1, f), lambda i: (0, 0)),
            pl.BlockSpec((1, f), lambda i: (0, 0)),
        ],
        out_specs=pl.BlockSpec((tb, f), lambda i: (i, 0)),
        compiler_params=pltpu.CompilerParams(
            dimension_semantics=("parallel",),
            vmem_limit_bytes=48 * 1024 * 1024),
        cost_estimate=pl.CostEstimate(
            flops=flops, transcendentals=2 * n_pad * f,
            bytes_accessed=bytes_accessed),
    )(hp, w, b, gamma, beta)
    return out if n_pad == n else out[:n]


# ---------------------------------------------------------------------------
# Parameter init (torch layout / torch default init) and kernel re-layout.
# ---------------------------------------------------------------------------
def init_params(key, obs_shape, feature_dim, num_filters=32):
    c, h, w = obs_shape
    keys = jax.random.split(key, 10)
    chans = [c, num_filters, num_filters, num_filters]
    convs = []
    for li in range(4):
        bound = 1.0 / math.sqrt(chans[li] * 9)
        cw = jax.random.uniform(keys[2 * li], (num_filters, chans[li], 3, 3),
                                jnp.float32, -bound, bound)
        cb = jax.random.uniform(keys[2 * li + 1], (num_filters,), jnp.float32,
                                -bound, bound)
        convs.append((cw, cb))

    ho1, wo1 = (h - 3) // 2 + 1, (w - 3) // 2 + 1
    fc_in = num_filters * (ho1 - 6) * (wo1 - 6)
    bound = 1.0 / math.sqrt(fc_in)
    fc_w = jax.random.uniform(keys[8], (feature_dim, fc_in), jnp.float32,
                              -bound, bound)
    fc_b = jax.random.uniform(keys[9], (feature_dim,), jnp.float32,
                              -bound, bound)
    gamma = jnp.ones((feature_dim,), jnp.float32)
    beta = jnp.zeros((feature_dim,), jnp.float32)
    return convs, (fc_w, fc_b, gamma, beta)


def prepare_kernel_params(convs, head_params, obs_shape):
    """One-time re-layout of torch-style params for the Pallas kernels."""
    c, h, w = obs_shape
    (w1, b1), (w2, b2), (w3, b3), (w4, b4) = convs
    cout = w1.shape[0]
    he, we = h + (h % 2), w + (w % 2)
    hs, ws = he // 2, we // 2

    # conv1: fold /255, rewrite the 3x3 stride-2 conv as a 2x2 stride-1 conv
    # over a 2x2 space-to-depth input, fused along K: [di, dj*cin1 + s2d_c, co]
    cin1 = 4 * c
    w1n = np.asarray(w1, np.float32) / 255.0
    w1f = np.zeros((2, 2 * cin1, cout), np.float32)
    for a in range(2):            # di (s2d row offset)
        for b_ in range(2):       # dj (s2d col offset)
            for p in range(2):    # sub-row inside the 2x2 cell
                for q in range(2):
                    ki, kj = 2 * a + p, 2 * b_ + q
                    if ki < 3 and kj < 3:
                        lo = b_ * cin1 + (p * 2 + q) * c
                        w1f[a, lo:lo + c, :] = w1n[:, :, ki, kj].T

    def fuse3(wl):  # (Cout, Cin, 3, 3) -> (3, 3*Cin, Cout): [di, dj*Cin+ci, co]
        cin = wl.shape[1]
        return jnp.transpose(wl, (2, 3, 1, 0)).reshape(3, 3 * cin, wl.shape[0])

    # Head: permute fc columns from torch NCHW flatten order to the kernel's
    # row-flattened NHWC order *including* the garbage columns, which get
    # exactly-zero weight rows (so no slicing pass is needed after the conv).
    ho1, wo1 = (h - 3) // 2 + 1, (w - 3) // 2 + 1
    ho4, wo4 = ho1 - 6, wo1 - 6
    assert ho4 == hs - 7 and wo4 == ws - 7
    fc_w, fc_b, gamma, beta = head_params
    feat = fc_w.shape[0]
    fc_t = np.asarray(fc_w, np.float32).reshape(feat, cout, ho4, wo4)
    fc_k = np.zeros((feat, ho4, ws, cout), np.float32)
    fc_k[:, :, :wo4, :] = np.transpose(fc_t, (0, 2, 3, 1))
    fc_kernel = fc_k.reshape(feat, ho4 * ws * cout).T       # (K_kernel, feat)

    return dict(
        w1=jnp.asarray(w1f, jnp.bfloat16), b1=b1.reshape(1, -1),
        w2=fuse3(w2).astype(jnp.bfloat16), b2=b2.reshape(1, -1),
        w3=fuse3(w3).astype(jnp.bfloat16), b3=b3.reshape(1, -1),
        w4=fuse3(w4).astype(jnp.bfloat16), b4=b4.reshape(1, -1),
        fc_w=jnp.asarray(fc_kernel, jnp.bfloat16), fc_b=fc_b.reshape(1, -1),
        gamma=gamma.reshape(1, -1), beta=beta.reshape(1, -1),
    )


# ---------------------------------------------------------------------------
# Forward pass.
# ---------------------------------------------------------------------------
def encoder_forward(obs, kparams):
    """obs: (N, C, H, W) float32 pixels in [0, 255]  ->  (N, feature_dim)."""
    n, c, h, w = obs.shape
    he, we = h + (h % 2), w + (w % 2)
    hs, ws = he // 2, we // 2
    assert hs >= 8 and ws >= 8, "obs spatial dims too small for 4 conv layers"

    # NCHW -> NHWC -> pad to even spatial -> 2x2 space-to-depth -> flatten rows.
    x = jnp.transpose(obs, (0, 2, 3, 1))
    if (he, we) != (h, w):
        x = jnp.pad(x, ((0, 0), (0, he - h), (0, we - w), (0, 0)))
    xs = (x.reshape(n, hs, 2, ws, 2, c)
           .transpose(0, 1, 3, 2, 4, 5)
           .reshape(n, hs * ws, 4 * c))
    xs = jnp.pad(xs, ((0, 0), (0, _PAD_ROWS), (0, 0)))

    heights = (hs - 1, hs - 3, hs - 5, hs - 7)           # conv1..4 output rows
    conv_out = conv_stack(xs, kparams["w1"], kparams["b1"], kparams["w2"],
                          kparams["b2"], kparams["w3"], kparams["b3"],
                          kparams["w4"], kparams["b4"],
                          row_w=ws, heights=heights)     # (N, h4*ws, 32) bf16

    # Free reshape; garbage columns are neutralized by zero fc-weight rows.
    hflat = conv_out.reshape(n, -1)
    assert hflat.shape[1] == kparams["fc_w"].shape[0]
    return head_linear_ln_tanh(hflat, kparams["fc_w"], kparams["fc_b"],
                               kparams["gamma"], kparams["beta"])


def _reference_forward(obs, convs, head_params):
    """Pure-JAX f32 reference matching the PyTorch module."""
    x = obs / 255.0
    for (cw, cb), s in zip(convs, [2, 1, 1, 1]):
        x = jax.lax.conv_general_dilated(
            x, cw, (s, s), "VALID",
            dimension_numbers=("NCHW", "OIHW", "NCHW"))
        x = jnp.maximum(x + cb.reshape(1, -1, 1, 1), 0.0)
    hh = x.reshape(x.shape[0], -1)
    fc_w, fc_b, gamma, beta = head_params
    y = hh @ fc_w.T + fc_b
    mean = jnp.mean(y, -1, keepdims=True)
    var = jnp.mean(jnp.square(y - mean), -1, keepdims=True)
    return jnp.tanh((y - mean) * jax.lax.rsqrt(var + 1e-5) * gamma + beta)


if __name__ == "__main__":
    obs_shape = (4, 20, 20)      # (C, H, W) -- small, but exercises every path
    feature_dim = 32
    batch = 2

    key = jax.random.PRNGKey(0)
    k_obs, k_params = jax.random.split(key)
    obs = jax.random.randint(k_obs, (batch,) + obs_shape, 0, 256
                             ).astype(jnp.float32)

    convs, head_params = init_params(k_params, obs_shape, feature_dim)
    kparams = prepare_kernel_params(convs, head_params, obs_shape)

    fwd = jax.jit(encoder_forward)
    out = jax.block_until_ready(fwd(obs, kparams))

    assert out.shape == (batch, feature_dim), out.shape
    assert bool(jnp.all(jnp.isfinite(out)))
    assert bool(jnp.all(jnp.abs(out) <= 1.0))            # tanh range

    ref = _reference_forward(obs, convs, head_params)
    max_err = float(jnp.max(jnp.abs(out - ref)))
    assert bool(jnp.allclose(out, ref, rtol=0.1, atol=0.1)), max_err
    print("KERNEL_OK")
</pallas_src>

<mosaic_0001>
module attributes {stable_mosaic.version = 11 : i64} {
  func.func @_conv_stack_kernel(%arg0: i32, %arg1: memref<1x108x16xf32, #tpu.memory_space<vmem>>, %arg2: memref<2x32x32xbf16, #tpu.memory_space<vmem>>, %arg3: memref<1x32xf32, #tpu.memory_space<vmem>>, %arg4: memref<3x96x32xbf16, #tpu.memory_space<vmem>>, %arg5: memref<1x32xf32, #tpu.memory_space<vmem>>, %arg6: memref<3x96x32xbf16, #tpu.memory_space<vmem>>, %arg7: memref<1x32xf32, #tpu.memory_space<vmem>>, %arg8: memref<3x96x32xbf16, #tpu.memory_space<vmem>>, %arg9: memref<1x32xf32, #tpu.memory_space<vmem>>, %arg10: memref<1x30x32xbf16, #tpu.memory_space<vmem>>, %arg11: memref<98x32xf32, #tpu.memory_space<vmem>>, %arg12: memref<78x32xf32, #tpu.memory_space<vmem>>, %arg13: memref<58x32xf32, #tpu.memory_space<vmem>>, %arg14: memref<100x96xf32, #tpu.memory_space<vmem>>) attributes {dimension_semantics = [#tpu.dimension_semantics<parallel>], iteration_bounds = array<i64: 2>, scalar_prefetch = 0 : i64, scratch_operands = 4 : i64, tpu.core_type = #tpu.core_type<tc>, window_params = [{transform_indices = @transform_0, window_bounds = array<i64: 1, 108, 16>}, {pipeline_mode = #tpu.pipeline_mode<synchronous>, transform_indices = @transform_1, window_bounds = array<i64: 2, 32, 32>}, {pipeline_mode = #tpu.pipeline_mode<synchronous>, transform_indices = @transform_2, window_bounds = array<i64: 1, 32>}, {pipeline_mode = #tpu.pipeline_mode<synchronous>, transform_indices = @transform_3, window_bounds = array<i64: 3, 96, 32>}, {pipeline_mode = #tpu.pipeline_mode<synchronous>, transform_indices = @transform_4, window_bounds = array<i64: 1, 32>}, {pipeline_mode = #tpu.pipeline_mode<synchronous>, transform_indices = @transform_5, window_bounds = array<i64: 3, 96, 32>}, {pipeline_mode = #tpu.pipeline_mode<synchronous>, transform_indices = @transform_6, window_bounds = array<i64: 1, 32>}, {pipeline_mode = #tpu.pipeline_mode<synchronous>, transform_indices = @transform_7, window_bounds = array<i64: 3, 96, 32>}, {pipeline_mode = #tpu.pipeline_mode<synchronous>, transform_indices = @transform_8, window_bounds = array<i64: 1, 32>}, {transform_indices = @transform_9, window_bounds = array<i64: 1, 30, 32>}]} {
    %c0 = arith.constant 0 : index
    %c0_0 = arith.constant 0 : index
    %0 = vector.load %arg3[%c0, %c0_0] : memref<1x32xf32, #tpu.memory_space<vmem>>, vector<1x32xf32>
    %c0_1 = arith.constant 0 : index
    %c0_2 = arith.constant 0 : index
    %c0_3 = arith.constant 0 : index
    %1 = vector.load %arg1[%c0_1, %c0_2, %c0_3] : memref<1x108x16xf32, #tpu.memory_space<vmem>>, vector<1x100x16xf32>
    %2 = vector.shape_cast %1 : vector<1x100x16xf32> to vector<100x16xf32>
    %c0_4 = arith.constant 0 : index
    %c0_5 = arith.constant 0 : index
    %3 = vector.load %arg14[%c0_4, %c0_5] : memref<100x96xf32, #tpu.memory_space<vmem>>, vector<100x16xf32>
    tpu.vector_store %arg14[%c0_4, %c0_5], %2 {strides = array<i32>} : memref<100x96xf32, #tpu.memory_space<vmem>>, vector<100x16xf32>,
    %c0_6 = arith.constant 0 : index
    %c1 = arith.constant 1 : index
    %c0_7 = arith.constant 0 : index
    %4 = vector.load %arg1[%c0_6, %c1, %c0_7] : memref<1x108x16xf32, #tpu.memory_space<vmem>>, vector<1x100x16xf32>
    %5 = vector.shape_cast %4 : vector<1x100x16xf32> to vector<100x16xf32>
    %c0_8 = arith.constant 0 : index
    %c16 = arith.constant 16 : index
    %6 = vector.load %arg14[%c0_8, %c16] : memref<100x96xf32, #tpu.memory_space<vmem>>, vector<100x16xf32>
    tpu.vector_store %arg14[%c0_8, %c16], %5 {strides = array<i32>} : memref<100x96xf32, #tpu.memory_space<vmem>>, vector<100x16xf32>,
    %cst = arith.constant 0.000000e+00 : f32
    %7 = vector.broadcast %cst : f32 to vector<90x32xf32>
    %c0_9 = arith.constant 0 : index
    %c0_10 = arith.constant 0 : index
    %8 = vector.load %arg14[%c0_9, %c0_10] : memref<100x96xf32, #tpu.memory_space<vmem>>, vector<90x32xf32>
    %9 = arith.truncf %8 : vector<90x32xf32> to vector<90x32xbf16>
    %c0_11 = arith.constant 0 : index
    %c0_12 = arith.constant 0 : index
    %c0_13 = arith.constant 0 : index
    %10 = vector.load %arg2[%c0_11, %c0_12, %c0_13] : memref<2x32x32xbf16, #tpu.memory_space<vmem>>, vector<1x32x32xbf16>
    %11 = vector.shape_cast %10 : vector<1x32x32xbf16> to vector<32x32xbf16>
    %cst_14 = arith.constant dense<0.000000e+00> : vector<90x32xf32>
    %12 = tpu.matmul %9, %11, %cst_14 {dimension_numbers = #tpu.dot_dimension_numbers<[1], [0], [0], [1], [0, 0, 1, 1], [], []>} : vector<90x32xbf16>, vector<32x32xbf16>, vector<90x32xf32> -> vector<90x32xf32>
    %13 = arith.addf %7, %12 : vector<90x32xf32>
    %c10 = arith.constant 10 : index
    %c0_15 = arith.constant 0 : index
    %14 = vector.load %arg14[%c10, %c0_15] : memref<100x96xf32, #tpu.memory_space<vmem>>, vector<90x32xf32>
    %15 = arith.truncf %14 : vector<90x32xf32> to vector<90x32xbf16>
    %c1_16 = arith.constant 1 : index
    %c0_17 = arith.constant 0 : index
    %c0_18 = arith.constant 0 : index
    %16 = vector.load %arg2[%c1_16, %c0_17, %c0_18] : memref<2x32x32xbf16, #tpu.memory_space<vmem>>, vector<1x32x32xbf16>
    %17 = vector.shape_cast %16 : vector<1x32x32xbf16> to vector<32x32xbf16>
    %cst_19 = arith.constant dense<0.000000e+00> : vector<90x32xf32>
    %18 = tpu.matmul %15, %17, %cst_19 {dimension_numbers = #tpu.dot_dimension_numbers<[1], [0], [0], [1], [0, 0, 1, 1], [], []>} : vector<90x32xbf16>, vector<32x32xbf16>, vector<90x32xf32> -> vector<90x32xf32>
    %19 = arith.addf %13, %18 : vector<90x32xf32>
    %20 = vector.broadcast %0 : vector<1x32xf32> to vector<90x32xf32>
    %21 = arith.addf %19, %20 : vector<90x32xf32>
    %cst_20 = arith.constant 0.000000e+00 : f32
    %22 = vector.broadcast %cst_20 : f32 to vector<90x32xf32>
    %23 = arith.maximumf %21, %22 : vector<90x32xf32>
    %c0_21 = arith.constant 0 : index
    %c0_22 = arith.constant 0 : index
    %24 = vector.load %arg11[%c0_21, %c0_22] : memref<98x32xf32, #tpu.memory_space<vmem>>, vector<90x32xf32>
    tpu.vector_store %arg11[%c0_21, %c0_22], %23 {strides = array<i32>} : memref<98x32xf32, #tpu.memory_space<vmem>>, vector<90x32xf32>,
    %cst_23 = arith.constant 0.000000e+00 : f32
    %25 = vector.broadcast %cst_23 : f32 to vector<8x32xf32>
    %c90 = arith.constant 90 : index
    %c0_24 = arith.constant 0 : index
    %26 = vector.load %arg11[%c90, %c0_24] : memref<98x32xf32, #tpu.memory_space<vmem>>, vector<8x32xf32>
    tpu.vector_store %arg11[%c90, %c0_24], %25 {strides = array<i32>} : memref<98x32xf32, #tpu.memory_space<vmem>>, vector<8x32xf32>,
    %c0_25 = arith.constant 0 : index
    %c0_26 = arith.constant 0 : index
    %27 = vector.load %arg5[%c0_25, %c0_26] : memref<1x32xf32, #tpu.memory_space<vmem>>, vector<1x32xf32>
    %c0_27 = arith.constant 0 : index
    %c0_28 = arith.constant 0 : index
    %28 = vector.load %arg11[%c0_27, %c0_28] : memref<98x32xf32, #tpu.memory_space<vmem>>, vector<90x32xf32>
    %c0_29 = arith.constant 0 : index
    %c0_30 = arith.constant 0 : index
    %29 = vector.load %arg14[%c0_29, %c0_30] : memref<100x96xf32, #tpu.memory_space<vmem>>, vector<90x32xf32>
    tpu.vector_store %arg14[%c0_29, %c0_30], %28 {strides = array<i32>} : memref<100x96xf32, #tpu.memory_space<vmem>>, vector<90x32xf32>,
    %c1_31 = arith.constant 1 : index
    %c0_32 = arith.constant 0 : index
    %30 = vector.load %arg11[%c1_31, %c0_32] : memref<98x32xf32, #tpu.memory_space<vmem>>, vector<90x32xf32>
    %c0_33 = arith.constant 0 : index
    %c32 = arith.constant 32 : index
    %31 = vector.load %arg14[%c0_33, %c32] : memref<100x96xf32, #tpu.memory_space<vmem>>, vector<90x32xf32>
    tpu.vector_store %arg14[%c0_33, %c32], %30 {strides = array<i32>} : memref<100x96xf32, #tpu.memory_space<vmem>>, vector<90x32xf32>,
    %c2 = arith.constant 2 : index
    %c0_34 = arith.constant 0 : index
    %32 = vector.load %arg11[%c2, %c0_34] : memref<98x32xf32, #tpu.memory_space<vmem>>, vector<90x32xf32>
    %c0_35 = arith.constant 0 : index
    %c64 = arith.constant 64 : index
    %33 = vector.load %arg14[%c0_35, %c64] : memref<100x96xf32, #tpu.memory_space<vmem>>, vector<90x32xf32>
    tpu.vector_store %arg14[%c0_35, %c64], %32 {strides = array<i32>} : memref<100x96xf32, #tpu.memory_space<vmem>>, vector<90x32xf32>,
    %cst_36 = arith.constant 0.000000e+00 : f32
    %34 = vector.broadcast %cst_36 : f32 to vector<70x32xf32>
    %c0_37 = arith.constant 0 : index
    %c0_38 = arith.constant 0 : index
    %35 = vector.load %arg14[%c0_37, %c0_38] : memref<100x96xf32, #tpu.memory_space<vmem>>, vector<70x96xf32>
    %36 = arith.truncf %35 : vector<70x96xf32> to vector<70x96xbf16>
    %c0_39 = arith.constant 0 : index
    %c0_40 = arith.constant 0 : index
    %c0_41 = arith.constant 0 : index
    %37 = vector.load %arg4[%c0_39, %c0_40, %c0_41] : memref<3x96x32xbf16, #tpu.memory_space<vmem>>, vector<1x96x32xbf16>
    %38 = vector.shape_cast %37 : vector<1x96x32xbf16> to vector<96x32xbf16>
    %cst_42 = arith.constant dense<0.000000e+00> : vector<70x32xf32>
    %39 = tpu.matmul %36, %38, %cst_42 {dimension_numbers = #tpu.dot_dimension_numbers<[1], [0], [0], [1], [0, 0, 1, 1], [], []>} : vector<70x96xbf16>, vector<96x32xbf16>, vector<70x32xf32> -> vector<70x32xf32>
    %40 = arith.addf %34, %39 : vector<70x32xf32>
    %c10_43 = arith.constant 10 : index
    %c0_44 = arith.constant 0 : index
    %41 = vector.load %arg14[%c10_43, %c0_44] : memref<100x96xf32, #tpu.memory_space<vmem>>, vector<70x96xf32>
    %42 = arith.truncf %41 : vector<70x96xf32> to vector<70x96xbf16>
    %c1_45 = arith.constant 1 : index
    %c0_46 = arith.constant 0 : index
    %c0_47 = arith.constant 0 : index
    %43 = vector.load %arg4[%c1_45, %c0_46, %c0_47] : memref<3x96x32xbf16, #tpu.memory_space<vmem>>, vector<1x96x32xbf16>
    %44 = vector.shape_cast %43 : vector<1x96x32xbf16> to vector<96x32xbf16>
    %cst_48 = arith.constant dense<0.000000e+00> : vector<70x32xf32>
    %45 = tpu.matmul %42, %44, %cst_48 {dimension_numbers = #tpu.dot_dimension_numbers<[1], [0], [0], [1], [0, 0, 1, 1], [], []>} : vector<70x96xbf16>, vector<96x32xbf16>, vector<70x32xf32> -> vector<70x32xf32>
    %46 = arith.addf %40, %45 : vector<70x32xf32>
    %c20 = arith.constant 20 : index
    %c0_49 = arith.constant 0 : index
    %47 = vector.load %arg14[%c20, %c0_49] : memref<100x96xf32, #tpu.memory_space<vmem>>, vector<70x96xf32>
    %48 = arith.truncf %47 : vector<70x96xf32> to vector<70x96xbf16>
    %c2_50 = arith.constant 2 : index
    %c0_51 = arith.constant 0 : index
    %c0_52 = arith.constant 0 : index
    %49 = vector.load %arg4[%c2_50, %c0_51, %c0_52] : memref<3x96x32xbf16, #tpu.memory_space<vmem>>, vector<1x96x32xbf16>
    %50 = vector.shape_cast %49 : vector<1x96x32xbf16> to vector<96x32xbf16>
    %cst_53 = arith.constant dense<0.000000e+00> : vector<70x32xf32>
    %51 = tpu.matmul %48, %50, %cst_53 {dimension_numbers = #tpu.dot_dimension_numbers<[1], [0], [0], [1], [0, 0, 1, 1], [], []>} : vector<70x96xbf16>, vector<96x32xbf16>, vector<70x32xf32> -> vector<70x32xf32>
    %52 = arith.addf %46, %51 : vector<70x32xf32>
    %53 = vector.broadcast %27 : vector<1x32xf32> to vector<70x32xf32>
    %54 = arith.addf %52, %53 : vector<70x32xf32>
    %cst_54 = arith.constant 0.000000e+00 : f32
    %55 = vector.broadcast %cst_54 : f32 to vector<70x32xf32>
    %56 = arith.maximumf %54, %55 : vector<70x32xf32>
    %c0_55 = arith.constant 0 : index
    %c0_56 = arith.constant 0 : index
    %57 = vector.load %arg12[%c0_55, %c0_56] : memref<78x32xf32, #tpu.memory_space<vmem>>, vector<70x32xf32>
    tpu.vector_store %arg12[%c0_55, %c0_56], %56 {strides = array<i32>} : memref<78x32xf32, #tpu.memory_space<vmem>>, vector<70x32xf32>,
    %cst_57 = arith.constant 0.000000e+00 : f32
    %58 = vector.broadcast %cst_57 : f32 to vector<8x32xf32>
    %c70 = arith.constant 70 : index
    %c0_58 = arith.constant 0 : index
    %59 = vector.load %arg12[%c70, %c0_58] : memref<78x32xf32, #tpu.memory_space<vmem>>, vector<8x32xf32>
    tpu.vector_store %arg12[%c70, %c0_58], %58 {strides = array<i32>} : memref<78x32xf32, #tpu.memory_space<vmem>>, vector<8x32xf32>,
    %c0_59 = arith.constant 0 : index
    %c0_60 = arith.constant 0 : index
    %60 = vector.load %arg7[%c0_59, %c0_60] : memref<1x32xf32, #tpu.memory_space<vmem>>, vector<1x32xf32>
    %c0_61 = arith.constant 0 : index
    %c0_62 = arith.constant 0 : index
    %61 = vector.load %arg12[%c0_61, %c0_62] : memref<78x32xf32, #tpu.memory_space<vmem>>, vector<70x32xf32>
    %c0_63 = arith.constant 0 : index
    %c0_64 = arith.constant 0 : index
    %62 = vector.load %arg14[%c0_63, %c0_64] : memref<100x96xf32, #tpu.memory_space<vmem>>, vector<70x32xf32>
    tpu.vector_store %arg14[%c0_63, %c0_64], %61 {strides = array<i32>} : memref<100x96xf32, #tpu.memory_space<vmem>>, vector<70x32xf32>,
    %c1_65 = arith.constant 1 : index
    %c0_66 = arith.constant 0 : index
    %63 = vector.load %arg12[%c1_65, %c0_66] : memref<78x32xf32, #tpu.memory_space<vmem>>, vector<70x32xf32>
    %c0_67 = arith.constant 0 : index
    %c32_68 = arith.constant 32 : index
    %64 = vector.load %arg14[%c0_67, %c32_68] : memref<100x96xf32, #tpu.memory_space<vmem>>, vector<70x32xf32>
    tpu.vector_store %arg14[%c0_67, %c32_68], %63 {strides = array<i32>} : memref<100x96xf32, #tpu.memory_space<vmem>>, vector<70x32xf32>,
    %c2_69 = arith.constant 2 : index
    %c0_70 = arith.constant 0 : index
    %65 = vector.load %arg12[%c2_69, %c0_70] : memref<78x32xf32, #tpu.memory_space<vmem>>, vector<70x32xf32>
    %c0_71 = arith.constant 0 : index
    %c64_72 = arith.constant 64 : index
    %66 = vector.load %arg14[%c0_71, %c64_72] : memref<100x96xf32, #tpu.memory_space<vmem>>, vector<70x32xf32>
    tpu.vector_store %arg14[%c0_71, %c64_72], %65 {strides = array<i32>} : memref<100x96xf32, #tpu.memory_space<vmem>>, vector<70x32xf32>,
    %cst_73 = arith.constant 0.000000e+00 : f32
    %67 = vector.broadcast %cst_73 : f32 to vector<50x32xf32>
    %c0_74 = arith.constant 0 : index
    %c0_75 = arith.constant 0 : index
    %68 = vector.load %arg14[%c0_74, %c0_75] : memref<100x96xf32, #tpu.memory_space<vmem>>, vector<50x96xf32>
    %69 = arith.truncf %68 : vector<50x96xf32> to vector<50x96xbf16>
    %c0_76 = arith.constant 0 : index
    %c0_77 = arith.constant 0 : index
    %c0_78 = arith.constant 0 : index
    %70 = vector.load %arg6[%c0_76, %c0_77, %c0_78] : memref<3x96x32xbf16, #tpu.memory_space<vmem>>, vector<1x96x32xbf16>
    %71 = vector.shape_cast %70 : vector<1x96x32xbf16> to vector<96x32xbf16>
    %cst_79 = arith.constant dense<0.000000e+00> : vector<50x32xf32>
    %72 = tpu.matmul %69, %71, %cst_79 {dimension_numbers = #tpu.dot_dimension_numbers<[1], [0], [0], [1], [0, 0, 1, 1], [], []>} : vector<50x96xbf16>, vector<96x32xbf16>, vector<50x32xf32> -> vector<50x32xf32>
    %73 = arith.addf %67, %72 : vector<50x32xf32>
    %c10_80 = arith.constant 10 : index
    %c0_81 = arith.constant 0 : index
    %74 = vector.load %arg14[%c10_80, %c0_81] : memref<100x96xf32, #tpu.memory_space<vmem>>, vector<50x96xf32>
    %75 = arith.truncf %74 : vector<50x96xf32> to vector<50x96xbf16>
    %c1_82 = arith.constant 1 : index
    %c0_83 = arith.constant 0 : index
    %c0_84 = arith.constant 0 : index
    %76 = vector.load %arg6[%c1_82, %c0_83, %c0_84] : memref<3x96x32xbf16, #tpu.memory_space<vmem>>, vector<1x96x32xbf16>
    %77 = vector.shape_cast %76 : vector<1x96x32xbf16> to vector<96x32xbf16>
    %cst_85 = arith.constant dense<0.000000e+00> : vector<50x32xf32>
    %78 = tpu.matmul %75, %77, %cst_85 {dimension_numbers = #tpu.dot_dimension_numbers<[1], [0], [0], [1], [0, 0, 1, 1], [], []>} : vector<50x96xbf16>, vector<96x32xbf16>, vector<50x32xf32> -> vector<50x32xf32>
    %79 = arith.addf %73, %78 : vector<50x32xf32>
    %c20_86 = arith.constant 20 : index
    %c0_87 = arith.constant 0 : index
    %80 = vector.load %arg14[%c20_86, %c0_87] : memref<100x96xf32, #tpu.memory_space<vmem>>, vector<50x96xf32>
    %81 = arith.truncf %80 : vector<50x96xf32> to vector<50x96xbf16>
    %c2_88 = arith.constant 2 : index
    %c0_89 = arith.constant 0 : index
    %c0_90 = arith.constant 0 : index
    %82 = vector.load %arg6[%c2_88, %c0_89, %c0_90] : memref<3x96x32xbf16, #tpu.memory_space<vmem>>, vector<1x96x32xbf16>
    %83 = vector.shape_cast %82 : vector<1x96x32xbf16> to vector<96x32xbf16>
    %cst_91 = arith.constant dense<0.000000e+00> : vector<50x32xf32>
    %84 = tpu.matmul %81, %83, %cst_91 {dimension_numbers = #tpu.dot_dimension_numbers<[1], [0], [0], [1], [0, 0, 1, 1], [], []>} : vector<50x96xbf16>, vector<96x32xbf16>, vector<50x32xf32> -> vector<50x32xf32>
    %85 = arith.addf %79, %84 : vector<50x32xf32>
    %86 = vector.broadcast %60 : vector<1x32xf32> to vector<50x32xf32>
    %87 = arith.addf %85, %86 : vector<50x32xf32>
    %cst_92 = arith.constant 0.000000e+00 : f32
    %88 = vector.broadcast %cst_92 : f32 to vector<50x32xf32>
    %89 = arith.maximumf %87, %88 : vector<50x32xf32>
    %c0_93 = arith.constant 0 : index
    %c0_94 = arith.constant 0 : index
    %90 = vector.load %arg13[%c0_93, %c0_94] : memref<58x32xf32, #tpu.memory_space<vmem>>, vector<50x32xf32>
    tpu.vector_store %arg13[%c0_93, %c0_94], %89 {strides = array<i32>} : memref<58x32xf32, #tpu.memory_space<vmem>>, vector<50x32xf32>,
    %cst_95 = arith.constant 0.000000e+00 : f32
    %91 = vector.broadcast %cst_95 : f32 to vector<8x32xf32>
    %c50 = arith.constant 50 : index
    %c0_96 = arith.constant 0 : index
    %92 = vector.load %arg13[%c50, %c0_96] : memref<58x32xf32, #tpu.memory_space<vmem>>, vector<8x32xf32>
    tpu.vector_store %arg13[%c50, %c0_96], %91 {strides = array<i32>} : memref<58x32xf32, #tpu.memory_space<vmem>>, vector<8x32xf32>,
    %c0_97 = arith.constant 0 : index
    %c0_98 = arith.constant 0 : index
    %93 = vector.load %arg9[%c0_97, %c0_98] : memref<1x32xf32, #tpu.memory_space<vmem>>, vector<1x32xf32>
    %c0_99 = arith.constant 0 : index
    %c0_100 = arith.constant 0 : index
    %94 = vector.load %arg13[%c0_99, %c0_100] : memref<58x32xf32, #tpu.memory_space<vmem>>, vector<50x32xf32>
    %c0_101 = arith.constant 0 : index
    %c0_102 = arith.constant 0 : index
    %95 = vector.load %arg14[%c0_101, %c0_102] : memref<100x96xf32, #tpu.memory_space<vmem>>, vector<50x32xf32>
    tpu.vector_store %arg14[%c0_101, %c0_102], %94 {strides = array<i32>} : memref<100x96xf32, #tpu.memory_space<vmem>>, vector<50x32xf32>,
    %c1_103 = arith.constant 1 : index
    %c0_104 = arith.constant 0 : index
    %96 = vector.load %arg13[%c1_103, %c0_104] : memref<58x32xf32, #tpu.memory_space<vmem>>, vector<50x32xf32>
    %c0_105 = arith.constant 0 : index
    %c32_106 = arith.constant 32 : index
    %97 = vector.load %arg14[%c0_105, %c32_106] : memref<100x96xf32, #tpu.memory_space<vmem>>, vector<50x32xf32>
    tpu.vector_store %arg14[%c0_105, %c32_106], %96 {strides = array<i32>} : memref<100x96xf32, #tpu.memory_space<vmem>>, vector<50x32xf32>,
    %c2_107 = arith.constant 2 : index
    %c0_108 = arith.constant 0 : index
    %98 = vector.load %arg13[%c2_107, %c0_108] : memref<58x32xf32, #tpu.memory_space<vmem>>, vector<50x32xf32>
    %c0_109 = arith.constant 0 : index
    %c64_110 = arith.constant 64 : index
    %99 = vector.load %arg14[%c0_109, %c64_110] : memref<100x96xf32, #tpu.memory_space<vmem>>, vector<50x32xf32>
    tpu.vector_store %arg14[%c0_109, %c64_110], %98 {strides = array<i32>} : memref<100x96xf32, #tpu.memory_space<vmem>>, vector<50x32xf32>,
    %cst_111 = arith.constant 0.000000e+00 : f32
    %100 = vector.broadcast %cst_111 : f32 to vector<30x32xf32>
    %c0_112 = arith.constant 0 : index
    %c0_113 = arith.constant 0 : index
    %101 = vector.load %arg14[%c0_112, %c0_113] : memref<100x96xf32, #tpu.memory_space<vmem>>, vector<30x96xf32>
    %102 = arith.truncf %101 : vector<30x96xf32> to vector<30x96xbf16>
    %c0_114 = arith.constant 0 : index
    %c0_115 = arith.constant 0 : index
    %c0_116 = arith.constant 0 : index
    %103 = vector.load %arg8[%c0_114, %c0_115, %c0_116] : memref<3x96x32xbf16, #tpu.memory_space<vmem>>, vector<1x96x32xbf16>
    %104 = vector.shape_cast %103 : vector<1x96x32xbf16> to vector<96x32xbf16>
    %cst_117 = arith.constant dense<0.000000e+00> : vector<30x32xf32>
    %105 = tpu.matmul %102, %104, %cst_117 {dimension_numbers = #tpu.dot_dimension_numbers<[1], [0], [0], [1], [0, 0, 1, 1], [], []>} : vector<30x96xbf16>, vector<96x32xbf16>, vector<30x32xf32> -> vector<30x32xf32>
    %106 = arith.addf %100, %105 : vector<30x32xf32>
    %c10_118 = arith.constant 10 : index
    %c0_119 = arith.constant 0 : index
    %107 = vector.load %arg14[%c10_118, %c0_119] : memref<100x96xf32, #tpu.memory_space<vmem>>, vector<30x96xf32>
    %108 = arith.truncf %107 : vector<30x96xf32> to vector<30x96xbf16>
    %c1_120 = arith.constant 1 : index
    %c0_121 = arith.constant 0 : index
    %c0_122 = arith.constant 0 : index
    %109 = vector.load %arg8[%c1_120, %c0_121, %c0_122] : memref<3x96x32xbf16, #tpu.memory_space<vmem>>, vector<1x96x32xbf16>
    %110 = vector.shape_cast %109 : vector<1x96x32xbf16> to vector<96x32xbf16>
    %cst_123 = arith.constant dense<0.000000e+00> : vector<30x32xf32>
    %111 = tpu.matmul %108, %110, %cst_123 {dimension_numbers = #tpu.dot_dimension_numbers<[1], [0], [0], [1], [0, 0, 1, 1], [], []>} : vector<30x96xbf16>, vector<96x32xbf16>, vector<30x32xf32> -> vector<30x32xf32>
    %112 = arith.addf %106, %111 : vector<30x32xf32>
    %c20_124 = arith.constant 20 : index
    %c0_125 = arith.constant 0 : index
    %113 = vector.load %arg14[%c20_124, %c0_125] : memref<100x96xf32, #tpu.memory_space<vmem>>, vector<30x96xf32>
    %114 = arith.truncf %113 : vector<30x96xf32> to vector<30x96xbf16>
    %c2_126 = arith.constant 2 : index
    %c0_127 = arith.constant 0 : index
    %c0_128 = arith.constant 0 : index
    %115 = vector.load %arg8[%c2_126, %c0_127, %c0_128] : memref<3x96x32xbf16, #tpu.memory_space<vmem>>, vector<1x96x32xbf16>
    %116 = vector.shape_cast %115 : vector<1x96x32xbf16> to vector<96x32xbf16>
    %cst_129 = arith.constant dense<0.000000e+00> : vector<30x32xf32>
    %117 = tpu.matmul %114, %116, %cst_129 {dimension_numbers = #tpu.dot_dimension_numbers<[1], [0], [0], [1], [0, 0, 1, 1], [], []>} : vector<30x96xbf16>, vector<96x32xbf16>, vector<30x32xf32> -> vector<30x32xf32>
    %118 = arith.addf %112, %117 : vector<30x32xf32>
    %119 = vector.broadcast %93 : vector<1x32xf32> to vector<30x32xf32>
    %120 = arith.addf %118, %119 : vector<30x32xf32>
    %cst_130 = arith.constant 0.000000e+00 : f32
    %121 = vector.broadcast %cst_130 : f32 to vector<30x32xf32>
    %122 = arith.maximumf %120, %121 : vector<30x32xf32>
    %123 = arith.truncf %122 : vector<30x32xf32> to vector<30x32xbf16>
    %c0_131 = arith.constant 0 : index
    %c0_132 = arith.constant 0 : index
    %c0_133 = arith.constant 0 : index
    %124 = vector.load %arg10[%c0_131, %c0_132, %c0_133] : memref<1x30x32xbf16, #tpu.memory_space<vmem>>, vector<1x30x32xbf16>
    %125 = vector.shape_cast %124 : vector<1x30x32xbf16> to vector<30x32xbf16>
    %126 = vector.shape_cast %123 : vector<30x32xbf16> to vector<1x30x32xbf16>
    tpu.vector_store %arg10[%c0_131, %c0_132, %c0_133], %126 {strides = array<i32>} : memref<1x30x32xbf16, #tpu.memory_space<vmem>>, vector<1x30x32xbf16>,
    return
  }
  func.func @transform_0(%arg0: i32) -> (i32, i32, i32) {
    %c0_i32 = arith.constant 0 : i32
    %c0_i32_0 = arith.constant 0 : i32
    %c0_i32_1 = arith.constant 0 : i32
    return %arg0, %c0_i32, %c0_i32_0 : i32, i32, i32
  }
  func.func @transform_1(%arg0: i32) -> (i32, i32, i32) {
    %c0_i32 = arith.constant 0 : i32
    %c0_i32_0 = arith.constant 0 : i32
    %c0_i32_1 = arith.constant 0 : i32
    %c0_i32_2 = arith.constant 0 : i32
    return %c0_i32, %c0_i32_0, %c0_i32_1 : i32, i32, i32
  }
  func.func @transform_2(%arg0: i32) -> (i32, i32) {
    %c0_i32 = arith.constant 0 : i32
    %c0_i32_0 = arith.constant 0 : i32
    %c0_i32_1 = arith.constant 0 : i32
    return %c0_i32, %c0_i32_0 : i32, i32
  }
  func.func @transform_3(%arg0: i32) -> (i32, i32, i32) {
    %c0_i32 = arith.constant 0 : i32
    %c0_i32_0 = arith.constant 0 : i32
    %c0_i32_1 = arith.constant 0 : i32
    %c0_i32_2 = arith.constant 0 : i32
    return %c0_i32, %c0_i32_0, %c0_i32_1 : i32, i32, i32
  }
  func.func @transform_4(%arg0: i32) -> (i32, i32) {
    %c0_i32 = arith.constant 0 : i32
    %c0_i32_0 = arith.constant 0 : i32
    %c0_i32_1 = arith.constant 0 : i32
    return %c0_i32, %c0_i32_0 : i32, i32
  }
  func.func @transform_5(%arg0: i32) -> (i32, i32, i32) {
    %c0_i32 = arith.constant 0 : i32
    %c0_i32_0 = arith.constant 0 : i32
    %c0_i32_1 = arith.constant 0 : i32
    %c0_i32_2 = arith.constant 0 : i32
    return %c0_i32, %c0_i32_0, %c0_i32_1 : i32, i32, i32
  }
  func.func @transform_6(%arg0: i32) -> (i32, i32) {
    %c0_i32 = arith.constant 0 : i32
    %c0_i32_0 = arith.constant 0 : i32
    %c0_i32_1 = arith.constant 0 : i32
    return %c0_i32, %c0_i32_0 : i32, i32
  }
  func.func @transform_7(%arg0: i32) -> (i32, i32, i32) {
    %c0_i32 = arith.constant 0 : i32
    %c0_i32_0 = arith.constant 0 : i32
    %c0_i32_1 = arith.constant 0 : i32
    %c0_i32_2 = arith.constant 0 : i32
    return %c0_i32, %c0_i32_0, %c0_i32_1 : i32, i32, i32
  }
  func.func @transform_8(%arg0: i32) -> (i32, i32) {
    %c0_i32 = arith.constant 0 : i32
    %c0_i32_0 = arith.constant 0 : i32
    %c0_i32_1 = arith.constant 0 : i32
    return %c0_i32, %c0_i32_0 : i32, i32
  }
  func.func @transform_9(%arg0: i32) -> (i32, i32, i32) {
    %c0_i32 = arith.constant 0 : i32
    %c0_i32_0 = arith.constant 0 : i32
    %c0_i32_1 = arith.constant 0 : i32
    return %arg0, %c0_i32, %c0_i32_0 : i32, i32, i32
  }
}

module attributes {stable_mosaic.version = 11 : i64} {
  func.func @_head_kernel(%arg0: i32, %arg1: memref<8x960xbf16, #tpu.memory_space<vmem>>, %arg2: memref<960x32xbf16, #tpu.memory_space<vmem>>, %arg3: memref<1x32xf32, #tpu.memory_space<vmem>>, %arg4: memref<1x32xf32, #tpu.memory_space<vmem>>, %arg5: memref<1x32xf32, #tpu.memory_space<vmem>>, %arg6: memref<8x32xf32, #tpu.memory_space<vmem>>) attributes {dimension_semantics = [#tpu.dimension_semantics<parallel>], iteration_bounds = array<i64: 1>, scalar_prefetch = 0 : i64, scratch_operands = 0 : i64, tpu.core_type = #tpu.core_type<tc>, window_params = [{transform_indices = @transform_0, window_bounds = array<i64: 8, 960>}, {pipeline_mode = #tpu.pipeline_mode<synchronous>, transform_indices = @transform_1, window_bounds = array<i64: 960, 32>}, {pipeline_mode = #tpu.pipeline_mode<synchronous>, transform_indices = @transform_2, window_bounds = array<i64: 1, 32>}, {pipeline_mode = #tpu.pipeline_mode<synchronous>, transform_indices = @transform_3, window_bounds = array<i64: 1, 32>}, {pipeline_mode = #tpu.pipeline_mode<synchronous>, transform_indices = @transform_4, window_bounds = array<i64: 1, 32>}, {transform_indices = @transform_5, window_bounds = array<i64: 8, 32>}]} {
    %c0 = arith.constant 0 : index
    %c0_0 = arith.constant 0 : index
    %0 = vector.load %arg1[%c0, %c0_0] : memref<8x960xbf16, #tpu.memory_space<vmem>>, vector<8x960xbf16>
    %c0_1 = arith.constant 0 : index
    %c0_2 = arith.constant 0 : index
    %1 = vector.load %arg2[%c0_1, %c0_2] : memref<960x32xbf16, #tpu.memory_space<vmem>>, vector<960x32xbf16>
    %cst = arith.constant dense<0.000000e+00> : vector<8x32xf32>
    %2 = tpu.matmul %0, %1, %cst {dimension_numbers = #tpu.dot_dimension_numbers<[1], [0], [0], [1], [0, 0, 1, 1], [], []>} : vector<8x960xbf16>, vector<960x32xbf16>, vector<8x32xf32> -> vector<8x32xf32>
    %c0_3 = arith.constant 0 : index
    %c0_4 = arith.constant 0 : index
    %3 = vector.load %arg3[%c0_3, %c0_4] : memref<1x32xf32, #tpu.memory_space<vmem>>, vector<1x32xf32>
    %4 = vector.broadcast %3 : vector<1x32xf32> to vector<8x32xf32>
    %5 = arith.addf %2, %4 : vector<8x32xf32>
    %cst_5 = arith.constant dense<0.000000e+00> : vector<8xf32>
    %6 = vector.multi_reduction <add>, %5, %cst_5 [1] : vector<8x32xf32> to vector<8xf32>
    %7 = vector.shape_cast %6 : vector<8xf32> to vector<8x1xf32>
    %cst_6 = arith.constant 3.200000e+01 : f32
    %8 = vector.broadcast %cst_6 : f32 to vector<8x1xf32>
    %9 = arith.divf %7, %8 : vector<8x1xf32>
    %10 = vector.broadcast %9 : vector<8x1xf32> to vector<8x32xf32>
    %11 = arith.subf %5, %10 : vector<8x32xf32>
    %12 = arith.mulf %11, %11 : vector<8x32xf32>
    %cst_7 = arith.constant dense<0.000000e+00> : vector<8xf32>
    %13 = vector.multi_reduction <add>, %12, %cst_7 [1] : vector<8x32xf32> to vector<8xf32>
    %14 = vector.shape_cast %13 : vector<8xf32> to vector<8x1xf32>
    %cst_8 = arith.constant 3.200000e+01 : f32
    %15 = vector.broadcast %cst_8 : f32 to vector<8x1xf32>
    %16 = arith.divf %14, %15 : vector<8x1xf32>
    %17 = vector.broadcast %9 : vector<8x1xf32> to vector<8x32xf32>
    %18 = arith.subf %5, %17 : vector<8x32xf32>
    %cst_9 = arith.constant 9.99999974E-6 : f32
    %19 = vector.broadcast %cst_9 : f32 to vector<8x1xf32>
    %20 = arith.addf %16, %19 : vector<8x1xf32>
    %21 = math.rsqrt %20 : vector<8x1xf32>
    %22 = vector.broadcast %21 : vector<8x1xf32> to vector<8x32xf32>
    %23 = arith.mulf %18, %22 : vector<8x32xf32>
    %c0_10 = arith.constant 0 : index
    %c0_11 = arith.constant 0 : index
    %24 = vector.load %arg4[%c0_10, %c0_11] : memref<1x32xf32, #tpu.memory_space<vmem>>, vector<1x32xf32>
    %25 = vector.broadcast %24 : vector<1x32xf32> to vector<8x32xf32>
    %26 = arith.mulf %23, %25 : vector<8x32xf32>
    %c0_12 = arith.constant 0 : index
    %c0_13 = arith.constant 0 : index
    %27 = vector.load %arg5[%c0_12, %c0_13] : memref<1x32xf32, #tpu.memory_space<vmem>>, vector<1x32xf32>
    %28 = vector.broadcast %27 : vector<1x32xf32> to vector<8x32xf32>
    %29 = arith.addf %26, %28 : vector<8x32xf32>
    %30 = math.tanh %29 : vector<8x32xf32>
    %c0_14 = arith.constant 0 : index
    %c0_15 = arith.constant 0 : index
    %31 = vector.load %arg6[%c0_14, %c0_15] : memref<8x32xf32, #tpu.memory_space<vmem>>, vector<8x32xf32>
    tpu.vector_store %arg6[%c0_14, %c0_15], %30 {strides = array<i32>} : memref<8x32xf32, #tpu.memory_space<vmem>>, vector<8x32xf32>,
    return
  }
  func.func @transform_0(%arg0: i32) -> (i32, i32) {
    %c0_i32 = arith.constant 0 : i32
    %c0_i32_0 = arith.constant 0 : i32
    return %arg0, %c0_i32 : i32, i32
  }
  func.func @transform_1(%arg0: i32) -> (i32, i32) {
    %c0_i32 = arith.constant 0 : i32
    %c0_i32_0 = arith.constant 0 : i32
    %c0_i32_1 = arith.constant 0 : i32
    return %c0_i32, %c0_i32_0 : i32, i32
  }
  func.func @transform_2(%arg0: i32) -> (i32, i32) {
    %c0_i32 = arith.constant 0 : i32
    %c0_i32_0 = arith.constant 0 : i32
    %c0_i32_1 = arith.constant 0 : i32
    return %c0_i32, %c0_i32_0 : i32, i32
  }
  func.func @transform_3(%arg0: i32) -> (i32, i32) {
    %c0_i32 = arith.constant 0 : i32
    %c0_i32_0 = arith.constant 0 : i32
    %c0_i32_1 = arith.constant 0 : i32
    return %c0_i32, %c0_i32_0 : i32, i32
  }
  func.func @transform_4(%arg0: i32) -> (i32, i32) {
    %c0_i32 = arith.constant 0 : i32
    %c0_i32_0 = arith.constant 0 : i32
    %c0_i32_1 = arith.constant 0 : i32
    return %c0_i32, %c0_i32_0 : i32, i32
  }
  func.func @transform_5(%arg0: i32) -> (i32, i32) {
    %c0_i32 = arith.constant 0 : i32
    %c0_i32_0 = arith.constant 0 : i32
    return %arg0, %c0_i32 : i32, i32
  }
}

</mosaic_0001>

<bundles_post_ra>
// kernel: encoder_forward.3
= control target key start
LH: loop header
LB: loop body
LE: loop exit
PB: predicated region body
PF: predicated region fallthrough
CT: control target
= control target key end

     0   :  { %vm536_vm0 = vcmask 523264   ;;  %vm644_vm1 = vcmask 261120   ;;  %s1239_s1 = inlined_call_operand.vmem [shape: bf16[960,32], index: 1, kind: input, shape index: {}]   ;;  %s1240_s2 = inlined_call_operand.vmem [shape: f32[1,32], index: 2, kind: input, shape index: {}]   ;;  %s1241_s0 = inlined_call_operand.vmem [shape: bf16[8,960], index: 0, kind: input, shape index: {}]   ;;  %s1242_s3 = inlined_call_operand.vmem [shape: f32[1,32], index: 3, kind: input, shape index: {}]   ;;  %s1243_s4 = inlined_call_operand.vmem [shape: f32[1,32], index: 4, kind: input, shape index: {}]   ;;  %s1244_s5 = inlined_call_operand.vmem [shape: f32[8,32], index: 5, kind: output, shape index: {}]  }
   0x1   :  { %v938_v0 = vld [vmem:[%s1239_s1 + $0x38] sm:$0xff]  ;;  %v937_v3 = vld [vmem:[%s1239_s1 + $0x30] sm:$0xff]  ;;  %v936_v8 = vld [vmem:[%s1239_s1 + $0x28] sm:$0xff] }
   0x2   :  { %v946_v1 = vld [vmem:[%s1239_s1 + $0x78] sm:$0xff]  ;;  %540 = vmatpush.bf16.msra.mxu0 %v938_v0  ;;  %v945_v4 = vld [vmem:[%s1239_s1 + $0x70] sm:$0xff]  ;;  %v944_v9 = vld [vmem:[%s1239_s1 + $0x68] sm:$0xff] }
   0x3   :  { %v954_v2 = vld [vmem:[%s1239_s1 + $0xb8] sm:$0xff]  ;;  %553 = vmatpush.bf16.msra.mxu1 %v946_v1  ;;  %v953_v6 = vld [vmem:[%s1239_s1 + $0xb0] sm:$0xff]  ;;  %v952_v10 = vld [vmem:[%s1239_s1 + $0xa8] sm:$0xff] }
   0x4   :  { %v962_v5 = vld [vmem:[%s1239_s1 + $0xf8] sm:$0xff]  ;;  %566 = vmatpush.bf16.msra.mxu2 %v954_v2  ;;  %v961_v7 = vld [vmem:[%s1239_s1 + $0xf0] sm:$0xff]  ;;  %v960_v11 = vld [vmem:[%s1239_s1 + $0xe8] sm:$0xff] }
   0x5   :  { %579 = vmatpush.bf16.msra.mxu3 %v962_v5  ;;  %v935_v12 = vld [vmem:[%s1239_s1 + $0x20] sm:$0xff]  ;;  %v934_v16 = vld [vmem:[%s1239_s1 + $0x18] sm:$0xff]  ;;  %v933_v20 = vld [vmem:[%s1239_s1 + $0x10] sm:$0xff] }
   0x6   :  { %541 = vmatpush.bf16.msra.mxu0 %v937_v3  ;;  %v943_v13 = vld [vmem:[%s1239_s1 + $0x60] sm:$0xff]  ;;  %v942_v17 = vld [vmem:[%s1239_s1 + $0x58] sm:$0xff]  ;;  %v941_v21 = vld [vmem:[%s1239_s1 + $0x50] sm:$0xff] }
   0x7   :  { %554 = vmatpush.bf16.msra.mxu1 %v945_v4  ;;  %v951_v14 = vld [vmem:[%s1239_s1 + $0xa0] sm:$0xff]  ;;  %v950_v18 = vld [vmem:[%s1239_s1 + $0x98] sm:$0xff]  ;;  %v949_v22 = vld [vmem:[%s1239_s1 + $0x90] sm:$0xff] }
   0x8   :  { %567 = vmatpush.bf16.msra.mxu2 %v953_v6  ;;  %v959_v15 = vld [vmem:[%s1239_s1 + $0xe0] sm:$0xff]  ;;  %v958_v19 = vld [vmem:[%s1239_s1 + $0xd8] sm:$0xff]  ;;  %v957_v23 = vld [vmem:[%s1239_s1 + $0xd0] sm:$0xff] }
   0x9   :  { %580 = vmatpush.bf16.msra.mxu3 %v961_v7  ;;  %v932_v24 = vld [vmem:[%s1239_s1 + $0x8] sm:$0xff]  ;;  %v21_v26 = vld [vmem:[%s1241_s0] sm:$0xff]  ;;  %v970_v35 = vld [vmem:[%s1239_s1 + $0x138] sm:$0xff] }
   0xa   :  { %542 = vmatpush.bf16.msra.mxu0 %v936_v8  ;;  %v940_v25 = vld [vmem:[%s1239_s1 + $0x48] sm:$0xff]  ;;  %v153_v30 = vunpack.c.l.b16 %v21_v26  ;;  %v931_v31 = vld [vmem:[%s1239_s1] sm:$0xff]  ;;  %v154_v36 = vunpack.c.h.b16 %v21_v26  ;;  %v978_v37 = vld [vmem:[%s1239_s1 + $0x178] sm:$0xff] }
   0xb   :  { %555 = vmatpush.bf16.msra.mxu1 %v944_v9  ;;  %v948_v27 = vld [vmem:[%s1239_s1 + $0x88] sm:$0xff]  ;;  %v939_v32 = vld [vmem:[%s1239_s1 + $0x40] sm:$0xff]  ;;  %v986_v38 = vld [vmem:[%s1239_s1 + $0x1b8] sm:$0xff] }
   0xc   :  { %568 = vmatpush.bf16.msra.mxu2 %v952_v10  ;;  %v22_v28 = vld [vmem:[%s1241_s0 + $0x8] sm:$0xff]  ;;  %v947_v34 = vld [vmem:[%s1239_s1 + $0x80] sm:$0xff]  ;;  %v161_v40 = vpack.c.b16 %v153_v30, %v153_v30  ;;  %v990_v43 = vld [vmem:[%s1239_s1 + $0x1d8] sm:$0xff]  ;;  %v162_v45 = vpack.c.b16 %v154_v36, %v154_v36 }
   0xd   :  { %581 = vmatpush.bf16.msra.mxu3 %v960_v11  ;;  %v956_v29 = vld [vmem:[%s1239_s1 + $0xc8] sm:$0xff]  ;;  %v155_v33 = vunpack.c.l.b16 %v22_v28  ;;  %v955_v39 = vld [vmem:[%s1239_s1 + $0xc0] sm:$0xff]  ;;  %v156_v41 = vunpack.c.h.b16 %v22_v28  ;;  %v969_v44 = vld [vmem:[%s1239_s1 + $0x130] sm:$0xff] }
   0xe   :  { %543 = vmatpush.bf16.msra.mxu0 %v935_v12  ;;  %v977_v46 = vld [vmem:[%s1239_s1 + $0x170] sm:$0xff]  ;;  %v968_v50 = vld [vmem:[%s1239_s1 + $0x128] sm:$0xff]  ;;  %v967_v54 = vld [vmem:[%s1239_s1 + $0x120] sm:$0xff] }
   0xf   :  { %556 = vmatpush.bf16.msra.mxu1 %v943_v13  ;;  %v163_v42 = vpack.c.b16 %v155_v33, %v155_v33  ;;  %v985_v47 = vld [vmem:[%s1239_s1 + $0x1b0] sm:$0xff]  ;;  %v164_v48 = vpack.c.b16 %v156_v41, %v156_v41  ;;  %v976_v51 = vld [vmem:[%s1239_s1 + $0x168] sm:$0xff]  ;;  %v975_v55 = vld [vmem:[%s1239_s1 + $0x160] sm:$0xff] }
  0x10   :  { %569 = vmatpush.bf16.msra.mxu2 %v951_v14  ;;  %v989_v49 = vld [vmem:[%s1239_s1 + $0x1d0] sm:$0xff]  ;;  %v984_v52 = vld [vmem:[%s1239_s1 + $0x1a8] sm:$0xff]  ;;  %v983_v56 = vld [vmem:[%s1239_s1 + $0x1a0] sm:$0xff] }
  0x11   :  { %582 = vmatpush.bf16.msra.mxu3 %v959_v15  ;;  %v988_v53 = vld [vmem:[%s1239_s1 + $0x1c8] sm:$0xff]  ;;  %v987_v57 = vld [vmem:[%s1239_s1 + $0x1c0] sm:$0xff]  ;;  %v24_v58 = vld [vmem:[%s1241_s0 + $0x18] sm:$0xff] }
  0x12   :  { %544 = vmatpush.bf16.msra.mxu0 %v934_v16  ;;  %v966_v59 = vld [vmem:[%s1239_s1 + $0x118] sm:$0xff]  ;;  %v160_v62 = vunpack.c.h.b16 %v24_v58  ;;  %v965_v63 = vld [vmem:[%s1239_s1 + $0x110] sm:$0xff]  ;;  %v964_v3 = vld [vmem:[%s1239_s1 + $0x108] sm:$0xff]  ;;  %v159_v10 = vunpack.c.l.b16 %v24_v58 }
  0x13   :  { %557 = vmatpush.bf16.msra.mxu1 %v942_v17  ;;  %v974_v60 = vld [vmem:[%s1239_s1 + $0x158] sm:$0xff]  ;;  %v973_v0 = vld [vmem:[%s1239_s1 + $0x150] sm:$0xff]  ;;  %v972_v5 = vld [vmem:[%s1239_s1 + $0x148] sm:$0xff] }
  0x14   :  { %570 = vmatpush.bf16.msra.mxu2 %v950_v18  ;;  %v982_v61 = vld [vmem:[%s1239_s1 + $0x198] sm:$0xff]  ;;  %v981_v1 = vld [vmem:[%s1239_s1 + $0x190] sm:$0xff]  ;;  %v168_v2 = vpack.c.b16 %v160_v62, %v160_v62  ;;  %v980_v6 = vld [vmem:[%s1239_s1 + $0x188] sm:$0xff]  ;;  %v167_v15 = vpack.c.b16 %v159_v10, %v159_v10 }
  0x15   :  { %583 = vmatpush.bf16.msra.mxu3 %v958_v19  ;;  %v23_v4 = vld [vmem:[%s1241_s0 + $0x10] sm:$0xff]  ;;  %v963_v8 = vld [vmem:[%s1239_s1 + $0x100] sm:$0xff] }
  0x16   :  { %545 = vmatpush.bf16.msra.mxu0 %v933_v20  ;;  %v157_v7 = vunpack.c.l.b16 %v23_v4  ;;  %v158_v9 = vunpack.c.h.b16 %v23_v4  ;;  %v971_v11 = vld [vmem:[%s1239_s1 + $0x140] sm:$0xff] }
  0x17   :  { %558 = vmatpush.bf16.msra.mxu1 %v941_v21  ;;  %v979_v12 = vld [vmem:[%s1239_s1 + $0x180] sm:$0xff] }
  0x18   :  { %571 = vmatpush.bf16.msra.mxu2 %v949_v22  ;;  %v165_v13 = vpack.c.b16 %v157_v7, %v157_v7  ;;  %v166_v14 = vpack.c.b16 %v158_v9, %v158_v9  ;;  %v992_v22 = vld [vmem:[%s1240_s2] ss:$0 sm:$0xff] }
  0x19   :  { %584 = vmatpush.bf16.msra.mxu3 %v957_v23 }
  0x1a   :  { %546 = vmatpush.bf16.msra.mxu0 %v932_v24 }
  0x1b   :  { %559 = vmatpush.bf16.msra.mxu1 %v940_v25 }
  0x1c   :  { %572 = vmatpush.bf16.msra.mxu2 %v948_v27 }
  0x1d   :  { %585 = vmatpush.bf16.msra.mxu3 %v956_v29 }
  0x1e   :  { %547 = vmatpush.bf16.msra.mxu0 %v931_v31 }
  0x1f   :  { %560 = vmatpush.bf16.msra.mxu1 %v939_v32 }
  0x20   :  { %573 = vmatpush.bf16.msra.mxu2 %v947_v34 }
  0x21   :  { %586 = vmatpush.bf16.msra.mxu3 %v955_v39  ;;  %548 = vmatmul.bf16.vlgmr.msra.gmra.mxu0 %v161_v40 }
  0x22   :  { %592 = vmatpush.bf16.msrb.mxu0 %v970_v35  ;;  %561 = vmatmul.bf16.vlgmr.msra.gmra.mxu1 %v162_v45 }
  0x23   :  { %605 = vmatpush.bf16.msrb.mxu1 %v978_v37  ;;  %574 = vmatmul.bf16.vlgmr.msra.gmra.mxu2 %v163_v42  ;;  %v1001_v42 = vmov 32.0  }
  0x24   :  { %618 = vmatpush.bf16.msrb.mxu2 %v986_v38  ;;  %587 = vmatmul.bf16.vlgmr.msra.gmra.mxu3 %v164_v48  ;;  %995 = vrcp.f32 %v1001_v42 }
  0x25   :  { %635 = vmatpush.bf16.msrb.mxu3 %v990_v43 }
  0x26   :  { %593 = vmatpush.bf16.msrb.mxu0 %v969_v44 }
  0x27   :  { %606 = vmatpush.bf16.msrb.mxu1 %v977_v46 }
  0x28   :  { %619 = vmatpush.bf16.msrb.mxu2 %v985_v47 }
  0x29   :  { %636 = vmatpush.bf16.msrb.mxu3 %v989_v49 }
  0x2a   :  { %594 = vmatpush.bf16.msrb.mxu0 %v968_v50  ;;  %v996_v43 = vpop.eup %995 }
  0x2b   :  { %607 = vmatpush.bf16.msrb.mxu1 %v976_v51  ;;  %v649_v44 = vmul.f32 32.0, %v996_v43  ;;  %vm653_vm2 = vweird.f32 %v996_v43 }
  0x2c   :  { %620 = vmatpush.bf16.msrb.mxu2 %v984_v52 }
  0x2d   :  { %637 = vmatpush.bf16.msrb.mxu3 %v988_v53  ;;  %v650_v45 = vsub.f32 1.0, %v649_v44 }
  0x2e   :  { %595 = vmatpush.bf16.msrb.mxu0 %v967_v54 }
  0x2f   :  { %608 = vmatpush.bf16.msrb.mxu1 %v975_v55  ;;  %v651_v46 = vmul.f32 %v996_v43, %v650_v45 }
  0x30   :  { %621 = vmatpush.bf16.msrb.mxu2 %v983_v56 }
  0x31   :  { %638 = vmatpush.bf16.msrb.mxu3 %v987_v57  ;;  %v652_v47 = vadd.f32 %v996_v43, %v651_v46 }
  0x32   :  { %596 = vmatpush.bf16.msrb.mxu0 %v966_v59 }
  0x33   :  { %609 = vmatpush.bf16.msrb.mxu1 %v974_v60  ;;  %v654_v48 = vsel %vm653_vm2, %v996_v43, %v652_v47 }
  0x34   :  { %622 = vmatpush.bf16.msrb.mxu2 %v982_v61  ;;  %930 = vmatmul.msk.bf16.vlgmr.msrb.gmra.mxu3 %vm536_vm0, %v168_v2 }
  0x36   :  { %597 = vmatpush.bf16.msrb.mxu0 %v965_v63  ;;  %v993_v63 = vld [vmem:[%s1242_s3] ss:$0 sm:$0xff] }
  0x37   :  { %610 = vmatpush.bf16.msrb.mxu1 %v973_v0 }
  0x38   :  { %623 = vmatpush.bf16.msrb.mxu2 %v981_v1  ;;  %v994_v1 = vld [vmem:[%s1243_s4] ss:$0 sm:$0xff] }
  0x3a   :  { %598 = vmatpush.bf16.msrb.mxu0 %v964_v3 }
  0x3b   :  { %611 = vmatpush.bf16.msrb.mxu1 %v972_v5 }
  0x3c   :  { %624 = vmatpush.bf16.msrb.mxu2 %v980_v6 }
  0x3e   :  { %599 = vmatpush.bf16.msrb.mxu0 %v963_v8 }
  0x3f   :  { %612 = vmatpush.bf16.msrb.mxu1 %v971_v11 }
  0x40   :  { %625 = vmatpush.bf16.msrb.mxu2 %v979_v12 }
  0x41   :  { %600 = vmatmul.bf16.vlgmr.msrb.gmra.mxu0 %v165_v13 }
  0x42   :  { %613 = vmatmul.bf16.vlgmr.msrb.gmra.mxu1 %v166_v14 }
  0x43   :  { %626 = vmatmul.bf16.vlgmr.msrb.gmra.mxu2 %v167_v15 }
  0x9e   :  { %v549_v16 = vpop.f32.mrf.mxu0 }
  0x9f   :  { %v562_v17 = vpop.f32.mrf.mxu1  ;;  %v550_v24 = vadd.f32 %v992_v22, %v549_v16 }
  0xa1   :  { %v563_v26 = vadd.f32 %v562_v17, %v550_v24 }
  0xa6   :  { %v575_v18 = vpop.f32.mrf.mxu2  ;;  %v551_v19 = vpop.f32.mrf.mxu0 }
  0xa7   :  { %v588_v20 = vpop.f32.mrf.mxu3  ;;  %v564_v21 = vpop.f32.mrf.mxu1  ;;  %v576_v27 = vadd.f32 %v575_v18, %v563_v26 }
  0xa9   :  { %v589_v29 = vadd.f32 %v588_v20, %v576_v27 }
  0xae   :  { %v577_v23 = vpop.f32.mrf.mxu2 }
  0xaf   :  { %v590_v25 = vpop.f32.mrf.mxu3 }
  0xb7   :  { %v640_v28 = vpop.f32.mrf.mxu3 }
  0xbe   :  { %v601_v30 = vpop.f32.mrf.mxu0 }
  0xbf   :  { %v614_v31 = vpop.f32.mrf.mxu1  ;;  %v602_v32 = vadd.f32 %v601_v30, %v589_v29  ;;  %v642_v33 = vpop.f32.mrf.mxu3 }
  0xc1   :  { %v615_v34 = vadd.f32 %v614_v31, %v602_v32 }
  0xc6   :  { %v627_v35 = vpop.f32.mrf.mxu2  ;;  %v603_v37 = vpop.f32.mrf.mxu0 }
  0xc7   :  { %v628_v36 = vadd.f32 %v627_v35, %v615_v34  ;;  %v616_v38 = vpop.f32.mrf.mxu1 }
  0xc9   :  { %v641_v39 = vadd.f32 %v640_v28, %v628_v36 }
  0xcb   :  { %v645_v40 = vsel %vm644_vm1, %v641_v39, 0.0 }
  0xcc   :  { %646 = vadd.xlane.f32.xlu0 %v645_v40 }
  0xce   :  { %v629_v41 = vpop.f32.mrf.mxu2 }
 0x13f   :  { %v647_v49 = vpop.xlane.xlu0 %646 }
 0x140   :  { %v655_v50 = vmul.f32 %v654_v48, %v647_v49 }
 0x142   :  { %v656_v51 = vsub.f32 %v641_v39, %v655_v50 }
 0x144   :  { %v657_v52 = vmul.f32 %v656_v51, %v656_v51 }
 0x146   :  { %v658_v53 = vsel %vm644_vm1, %v657_v52, 0.0 }
 0x147   :  { %659 = vadd.xlane.f32.xlu0 %v658_v53 }
 0x1ba   :  { %v660_v54 = vpop.xlane.xlu0 %659 }
 0x1bb   :  { %v661_v55 = vmul.f32 %v660_v54, %v654_v48 }
 0x1bd   :  { %v662_v56 = vadd.f32 1e-05, %v661_v55 }
 0x1bf   :  { %997 = vrsqrt.f32 %v662_v56  ;;  %vm669_vm4 = vweird.f32 %v662_v56 }
 0x1c5   :  { %v998_v57 = vpop.eup %997 }
 0x1c6   :  { %v664_v58 = vmul.f32 %v998_v57, %v662_v56  ;;  %vm670_vm3 = vweird.f32 %v998_v57 }
 0x1c7   :  { %vm671_vm5 = vmor %vm669_vm4, %vm670_vm3 }
 0x1c8   :  { %v665_v59 = vmul.f32 %v998_v57, %v664_v58 }
 0x1ca   :  { %v666_v60 = vmul.f32 0.5, %v665_v59 }
 0x1cc   :  { %v667_v61 = vsub.f32 1.5, %v666_v60 }
 0x1ce   :  { %v668_v62 = vmul.f32 %v998_v57, %v667_v61 }
 0x1d0   :  { %v672_v0 = vsel %vm671_vm5, %v998_v57, %v668_v62 }
 0x1d1   :  { %v673_v2 = vmul.f32 %v672_v0, %v656_v51 }
 0x1d3   :  { %v678_v3 = vmul.f32 %v993_v63, %v673_v2 }
 0x1d5   :  { %v683_v4 = vadd.f32 %v994_v1, %v678_v3 }
 0x1d7   :  { %999 = vtanh.f32 %v683_v4 }
 0x1dd   :  { %v1000_v5 = vpop.eup %999 }
 0x1de   :  { %685 = vst.msk [vmem:[%s1244_s5] sm:$0xff] %vm644_vm1, %v1000_v5 }

// kernel: encoder_forward.2
= control target key start
LH: loop header
LB: loop body
LE: loop exit
PB: predicated region body
PF: predicated region fallthrough
CT: control target
= control target key end

     0   :  { %s2594_s30 = smov 0   ;;  %s3104_s0 = inlined_call_operand.vmem [shape: f32[2,108,16], index: 0, kind: input, shape index: {}]   ;;  %s3105_s1 = inlined_call_operand.vmem [shape: bf16[2,32,32], index: 1, kind: input, shape index: {}]   ;;  %s3106_s2 = inlined_call_operand.vmem [shape: f32[1,32], index: 2, kind: input, shape index: {}]   ;;  %s3107_s3 = inlined_call_operand.vmem [shape: bf16[3,96,32], index: 3, kind: input, shape index: {}]   ;;  %s3108_s4 = inlined_call_operand.vmem [shape: f32[1,32], index: 4, kind: input, shape index: {}]   ;;  %s3109_s5 = inlined_call_operand.vmem [shape: bf16[3,96,32], index: 5, kind: input, shape index: {}]   ;;  %s3110_s6 = inlined_call_operand.vmem [shape: f32[1,32], index: 6, kind: input, shape index: {}]   ;;  %s3111_s7 = inlined_call_operand.vmem [shape: bf16[3,96,32], index: 7, kind: input, shape index: {}]   ;;  %s3112_s8 = inlined_call_operand.vmem [shape: f32[1,32], index: 8, kind: input, shape index: {}]   ;;  %s3113_s9 = inlined_call_operand.vmem [shape: bf16[2,30,32], index: 9, kind: output, shape index: {}]  }
   0x1 LB: > { %s2093_s10 = sadd.s32 4294967295, %s2538_s30   ;;  %p2097_p0 = scmp.ge.s32.totalorder %s2538_s30, 1  ;;  %s2538_s30 = sphi %s2594_s30, %s19_s30  }
   0x2   : > { %p287_p1 = scmp.lt.s32.totalorder %s2538_s30, 3 }
   0x4   : > { %p288_p2 = pnand %p2097_p0, %p287_p1 }
   0x5   : > { %p323_p3 = scmp.lt.s32.totalorder (!%p288_p2), %s2093_s10, 1  ;;  %s2540_s15 = smov (!%p288_p2), 16  }
   0x6   : > { %291 = sbr.rel (%p288_p2) target bundleno = 1267 (0x4f3), region = 56  ;;  %s2541_s26 = smov (!%p288_p2), 64  }
   0x7   : > { %s2542_s27 = smov (!%p288_p2), 32  }
   0xb   : > { %s3115_s10 = smov (!%p323_p3, %s2093_s10), 1  ;;  %vm348_vm0 = vcmask 130048   ;;  %vm428_vm1 = vcmask 261248   ;;  %v2460_v20 = vld [vmem:[%s3105_s1 + $0x18] sm:$0xff]  ;;  %v2458_v21 = vld [vmem:[%s3105_s1 + $0x8] sm:$0xff]  ;;  %v2459_v22 = vld [vmem:[%s3105_s1 + $0x10] sm:$0xff] }
   0xc   : > { %s2515_s11 = smul.u32 112, %s3115_s10  ;;  %525 = vmatpush.bf16.msra.mxu0 %v2460_v20  ;;  %594 = vmatpush.bf16.msra.mxu1 %v2458_v21  ;;  %v2457_v23 = vld [vmem:[%s3105_s1] sm:$0xff]  ;;  %vm500_vm2 = vcmask 261120   ;;  %vm361_vm3 = vcmask 125952   ;;  %vm441_vm4 = vcmask 257152   ;;  %vm665_vm5 = vcmask 254976  }
   0xd   : > { %vm753_vm6 = vcmask 523520   ;;  %vm827_vm7 = vcmask 785920   ;;  %vm930_vm8 = vcmask 785408   ;;  %vm765_vm9 = vcmask 517376   ;;  %s2456_s17 = sshll.u32 %s3115_s10, 4 }
   0xe   : > { %s2608_s14 = scalar_lea.vmem %s3104_s0, %s2515_s11  ;;  %vm839_vm10 = vcmask 779776   ;;  %vm1212_vm11 = vcmask 259072   ;;  %vm1287_vm12 = vcmask 521472   ;;  %vm1342_vm13 = vcmask 783872   ;;  %s332_s20 = scalar_lea.vmem %s3113_s9, %s2456_s17 }
   0xf   : > { %v365_v0 = vld [vmem:[%s2608_s14 + $0x11] sm:$0xff]  ;;  %v363_v1 = vld [vmem:[%s2608_s14 + $0x1] sm:$0xff]  ;;  %v366_v3 = vld [vmem:[%s2608_s14 + $0x19] sm:$0xff]  ;;  %vm2032_vm14 = vcmask 257024   ;;  %vm2036_vm15 = vcmask 256000  }
  0x10   : > { %393 = vrot.lane.b32.xlu1 %v365_v0, %s2540_s15  ;;  %389 = vrot.lane.b32.xlu0 %v363_v1, %s2540_s15  ;;  %v367_v2 = vld [vmem:[%s2608_s14 + $0x21] sm:$0xff]  ;;  %v364_v4 = vld [vmem:[%s2608_s14 + $0x9] sm:$0xff] }
  0x11   : > { %397 = vrot.lane.b32.xlu2 %v367_v2, %s2540_s15  ;;  %v368_v5 = vld [vmem:[%s2608_s14 + $0x29] sm:$0xff]  ;;  %v370_v6 = vld [vmem:[%s2608_s14 + $0x39] sm:$0xff]  ;;  %v369_v7 = vld [vmem:[%s2608_s14 + $0x31] sm:$0xff]  ;;  %526 = vmatpush.bf16.msra.mxu0 %v2459_v22 }
  0x12   : > { %v371_v8 = vld [vmem:[%s2608_s14 + $0x41] sm:$0xff]  ;;  %v372_v9 = vld [vmem:[%s2608_s14 + $0x49] sm:$0xff]  ;;  %v373_v10 = vld [vmem:[%s2608_s14 + $0x51] sm:$0xff]  ;;  %595 = vmatpush.bf16.msra.mxu1 %v2457_v23 }
  0x13   : > { %v374_v11 = vld [vmem:[%s2608_s14 + $0x59] sm:$0xff]  ;;  %v375_v12 = vld [vmem:[%s2608_s14 + $0x61] sm:$0xf]  ;;  %v337_v14 = vld [vmem:[%s2608_s14 + $0x10] sm:$0xff] }
  0x14   : > { %v339_v13 = vld [vmem:[%s2608_s14 + $0x20] sm:$0xff]  ;;  %351 = vst.msk [vmem:[#allocation5 + $0x10] sm:$0xff] %vm348_vm0, %v337_v14  ;;  %v340_v16 = vld [vmem:[%s2608_s14 + $0x28] sm:$0xff]  ;;  %v338_v17 = vld [vmem:[%s2608_s14 + $0x18] sm:$0xff] }
  0x15   : > { %353 = vst.msk [vmem:[#allocation5 + $0x20] sm:$0xff] %vm348_vm0, %v339_v13  ;;  %v335_v15 = vld [vmem:[%s2608_s14] sm:$0xff]  ;;  %v336_v18 = vld [vmem:[%s2608_s14 + $0x8] sm:$0xff]  ;;  %v342_v25 = vld [vmem:[%s2608_s14 + $0x38] sm:$0xff] }
  0x16   : > { %349 = vst.msk [vmem:[#allocation5] sm:$0xff] %vm348_vm0, %v335_v15  ;;  %v341_v26 = vld [vmem:[%s2608_s14 + $0x30] sm:$0xff]  ;;  %v343_v30 = vld [vmem:[%s2608_s14 + $0x40] sm:$0xff]  ;;  %v344_v31 = vld [vmem:[%s2608_s14 + $0x48] sm:$0xff] }
  0x17   : > { %354 = vst.msk [vmem:[#allocation5 + $0x28] sm:$0xff] %vm348_vm0, %v340_v16  ;;  %v346_v43 = vld [vmem:[%s2608_s14 + $0x58] sm:$0xff]  ;;  %v345_v44 = vld [vmem:[%s2608_s14 + $0x50] sm:$0xff]  ;;  %v347_v54 = vld [vmem:[%s2608_s14 + $0x60] sm:$0xf] }
  0x18   : > { %395 = vrot.lane.b32.xlu1 %v366_v3, %s2540_s15  ;;  %391 = vrot.lane.b32.xlu0 %v364_v4, %s2540_s15  ;;  %352 = vst.msk [vmem:[#allocation5 + $0x18] sm:$0xff] %vm348_vm0, %v338_v17  ;;  %v2687_v15 = vld [vmem:[%s3106_s2] ss:$0 sm:$0xff] }
  0x19   : > { %399 = vrot.lane.b32.xlu2 %v368_v5, %s2540_s15  ;;  %350 = vst.msk [vmem:[#allocation5 + $0x8] sm:$0xff] %vm348_vm0, %v336_v18 }
  0x1a   : > { %356 = vst.msk [vmem:[#allocation5 + $0x38] sm:$0xff] %vm348_vm0, %v342_v25 }
  0x1b   : > { %355 = vst.msk [vmem:[#allocation5 + $0x30] sm:$0xff] %vm348_vm0, %v341_v26 }
  0x1c   : > { %357 = vst.msk [vmem:[#allocation5 + $0x40] sm:$0xff] %vm348_vm0, %v343_v30 }
  0x1d   : > { %358 = vst.msk [vmem:[#allocation5 + $0x48] sm:$0xff] %vm348_vm0, %v344_v31 }
  0x1e   : > { %360 = vst.msk [vmem:[#allocation5 + $0x58] sm:$0xff] %vm348_vm0, %v346_v43 }
  0x1f   : > { %359 = vst.msk [vmem:[#allocation5 + $0x50] sm:$0xff] %vm348_vm0, %v345_v44 }
  0x20   : > { %403 = vrot.lane.b32.xlu1 %v370_v6, %s2540_s15  ;;  %401 = vrot.lane.b32.xlu0 %v369_v7, %s2540_s15  ;;  %362 = vst.msk [vmem:[#allocation5 + $0x60] sm:$0xf] %vm361_vm3, %v347_v54 }
  0x21   : > { %405 = vrot.lane.b32.xlu2 %v371_v8, %s2540_s15 }
  0x28   : > { %407 = vrot.lane.b32.xlu0 %v372_v9, %s2540_s15  ;;  %409 = vrot.lane.b32.xlu1 %v373_v10, %s2540_s15 }
  0x29   : > { %411 = vrot.lane.b32.xlu2 %v374_v11, %s2540_s15 }
  0x30   : > { %413 = vrot.lane.b32.xlu0 %v375_v12, %s2540_s15 }
  0x6b   : > { %v398_v19 = vpop.permute.xlu2 %397 }
  0x6c   : > { %433 = vst.msk [vmem:[#allocation5 + $0x20] sm:$0xff] %vm428_vm1, %v398_v19 }
  0x73   : > { %v400_v24 = vpop.permute.xlu2 %399  ;;  %v447_v55 = vld [vmem:[#allocation5 + $0x20] sm:$0xff] }
  0x74   : > { %434 = vst.msk [vmem:[#allocation5 + $0x28] sm:$0xff] %vm428_vm1, %v400_v24 }
  0x7b   : > { %v406_v29 = vpop.permute.xlu2 %405  ;;  %v468_v47 = vld [vmem:[#allocation5 + $0x22] sm:$0xff] }
  0x7c   : > { %437 = vst.msk [vmem:[#allocation5 + $0x40] sm:$0xff] %vm428_vm1, %v406_v29  ;;  %v448_v58 = vld [vmem:[#allocation5 + $0x28] sm:$0xff] }
  0x7d   : > { %v457_v60 = vpack.c.bf16 %v448_v58, %v447_v55 }
  0x82   : > { %v394_v27 = vpop.permute.xlu1 %393  ;;  %v390_v28 = vpop.permute.xlu0 %389 }
  0x83   : > { %431 = vst.msk [vmem:[#allocation5 + $0x10] sm:$0xff] %vm428_vm1, %v394_v27  ;;  %v412_v42 = vpop.permute.xlu2 %411  ;;  %v451_v5 = vld [vmem:[#allocation5 + $0x40] sm:$0xff] }
  0x84   : > { %429 = vst.msk [vmem:[#allocation5] sm:$0xff] %vm428_vm1, %v390_v28 }
  0x85   : > { %440 = vst.msk [vmem:[#allocation5 + $0x58] sm:$0xff] %vm428_vm1, %v412_v42 }
  0x8a   : > { %v396_v32 = vpop.permute.xlu1 %395  ;;  %v392_v33 = vpop.permute.xlu0 %391  ;;  %v445_v50 = vld [vmem:[#allocation5 + $0x10] sm:$0xff] }
  0x8b   : > { %432 = vst.msk [vmem:[#allocation5 + $0x18] sm:$0xff] %vm428_vm1, %v396_v32  ;;  %v443_v38 = vld [vmem:[#allocation5] sm:$0xff] }
  0x8c   : > { %430 = vst.msk [vmem:[#allocation5 + $0x8] sm:$0xff] %vm428_vm1, %v392_v33  ;;  %v454_v12 = vld [vmem:[#allocation5 + $0x58] sm:$0x3] }
  0x92   : > { %v466_v34 = vld [vmem:[#allocation5 + $0x12] sm:$0xff]  ;;  %v404_v35 = vpop.permute.xlu1 %403  ;;  %v402_v36 = vpop.permute.xlu0 %401  ;;  %v467_v48 = vld [vmem:[#allocation5 + $0x1a] sm:$0xff] }
  0x93   : > { %v465_v37 = vld [vmem:[#allocation5 + $0xa] sm:$0xff]  ;;  %436 = vst.msk [vmem:[#allocation5 + $0x38] sm:$0xff] %vm428_vm1, %v404_v35  ;;  %v446_v49 = vld [vmem:[#allocation5 + $0x18] sm:$0xff]  ;;  %v478_v51 = vpack.c.bf16 %v468_v47, %v467_v48 }
  0x94   : > { %v444_v39 = vld [vmem:[#allocation5 + $0x8] sm:$0xff]  ;;  %v477_v40 = vpack.c.bf16 %v466_v34, %v465_v37  ;;  %435 = vst.msk [vmem:[#allocation5 + $0x30] sm:$0xff] %vm428_vm1, %v402_v36  ;;  %v456_v52 = vpack.c.bf16 %v446_v49, %v445_v50 }
  0x95   : > { %v455_v41 = vpack.c.bf16 %v444_v39, %v443_v38 }
  0x96   : > { %2113 = vmatmul.msk.bf16.vlgmr.msra.gmra.mxu0 %vm500_vm2, %v477_v40 }
  0x97   : > { %2127 = vmatmul.msk.bf16.vlgmr.msra.gmra.mxu1 %vm500_vm2, %v455_v41 }
  0x9a   : > { %v408_v45 = vpop.permute.xlu0 %407  ;;  %v410_v46 = vpop.permute.xlu1 %409  ;;  %v471_v61 = vld [vmem:[#allocation5 + $0x3a] sm:$0xff] }
  0x9b   : > { %438 = vst.msk [vmem:[#allocation5 + $0x48] sm:$0xff] %vm428_vm1, %v408_v45  ;;  %v469_v56 = vld [vmem:[#allocation5 + $0x2a] sm:$0xff]  ;;  %v470_v57 = vld [vmem:[#allocation5 + $0x32] sm:$0xff] }
  0x9c   : > { %439 = vst.msk [vmem:[#allocation5 + $0x50] sm:$0xff] %vm428_vm1, %v410_v46  ;;  %v479_v59 = vpack.c.bf16 %v470_v57, %v469_v56  ;;  %v449_v63 = vld [vmem:[#allocation5 + $0x30] sm:$0xff]  ;;  %v450_v0 = vld [vmem:[#allocation5 + $0x38] sm:$0xff] }
  0x9d   : > { %v458_v2 = vpack.c.bf16 %v450_v0, %v449_v63 }
  0xa2   : > { %v414_v53 = vpop.permute.xlu0 %413  ;;  %v472_v62 = vld [vmem:[#allocation5 + $0x42] sm:$0xff] }
  0xa3   : > { %442 = vst.msk [vmem:[#allocation5 + $0x60] sm:$0xf] %vm441_vm4, %v414_v53  ;;  %v480_v1 = vpack.c.bf16 %v472_v62, %v471_v61  ;;  %v473_v3 = vld [vmem:[#allocation5 + $0x4a] sm:$0xff]  ;;  %v474_v4 = vld [vmem:[#allocation5 + $0x52] sm:$0xff] }
  0xa4   : > { %v452_v6 = vld [vmem:[#allocation5 + $0x48] sm:$0xff]  ;;  %v481_v7 = vpack.c.bf16 %v474_v4, %v473_v3  ;;  %v453_v11 = vld [vmem:[#allocation5 + $0x50] sm:$0xff] }
  0xa5   : > { %v459_v8 = vpack.c.bf16 %v452_v6, %v451_v5  ;;  %v460_v14 = vpack.c.bf16 %v454_v12, %v453_v11 }
  0xa6   : > { %2114 = vmatmul.msk.bf16.gmra.mxu0 %vm500_vm2, %v478_v51 }
  0xa7   : > { %2128 = vmatmul.msk.bf16.gmra.mxu1 %vm500_vm2, %v456_v52 }
  0xaa   : > { %v475_v9 = vld [vmem:[#allocation5 + $0x5a] sm:$0xff]  ;;  %v476_v10 = vld [vmem:[#allocation5 + $0x62] sm:$0x3] }
  0xab   : > { %v482_v13 = vpack.c.bf16 %v476_v10, %v475_v9  ;;  %v2478_v10 = vld [vmem:[%s3107_s3 + $0x88] sm:$0xff] }
  0xac   : > { %1143 = vmatpush.bf16.msrb.mxu0 %v2478_v10 }
  0xb6   : > { %2115 = vmatmul.msk.bf16.gmra.mxu0 %vm500_vm2, %v479_v59 }
  0xb7   : > { %2129 = vmatmul.msk.bf16.gmra.mxu1 %vm500_vm2, %v457_v60 }
  0xc6   : > { %2116 = vmatmul.msk.bf16.gmra.mxu0 %vm500_vm2, %v480_v1 }
  0xc7   : > { %2130 = vmatmul.msk.bf16.gmra.mxu1 %vm500_vm2, %v458_v2 }
  0xd6   : > { %2117 = vmatmul.msk.bf16.gmra.mxu0 %vm500_vm2, %v481_v7 }
  0xd7   : > { %2131 = vmatmul.msk.bf16.gmra.mxu1 %vm500_vm2, %v459_v8 }
  0xe6   : > { %2118 = vmatmul.msk.bf16.gmra.mxu0 %vm500_vm2, %v482_v13  ;;  %v2543_v13 = vmov 0.0  }
  0xe7   : > { %2132 = vmatmul.msk.bf16.gmra.mxu1 %vm500_vm2, %v460_v14  ;;  %667 = vst.msk [vmem:[#allocation2 + $0x5a] sm:$0xff] %vm500_vm2, %v2543_v13 }
  0xe8   : > { %1214 = vst.msk [vmem:[#allocation3 + $0x46] sm:$0xff] %vm500_vm2, %v2543_v13 }
  0xe9   : > { %1674 = vst.msk [vmem:[#allocation4 + $0x32] sm:$0xff] %vm500_vm2, %v2543_v13 }
 0x113   : > { %v528_v16 = vpop.f32.mrf.mxu0 }
 0x114   : > { %v597_v17 = vpop.f32.mrf.mxu1 }
 0x115   : > { %v598_v18 = vadd.f32 %v597_v17, %v528_v16 }
 0x117   : > { %v630_v19 = vadd.f32 %v2687_v15, %v598_v18 }
 0x119   : > { %v642_v20 = vmax.f32 %v630_v19, 0.0 }
 0x11b   : > { %654 = vst.msk [vmem:[#allocation2] sm:$0xff] %vm500_vm2, %v642_v20  ;;  %v530_v21 = vpop.f32.mrf.mxu0 }
 0x11c   : > { %v599_v22 = vpop.f32.mrf.mxu1 }
 0x11d   : > { %v600_v23 = vadd.f32 %v599_v22, %v530_v21 }
 0x11f   : > { %v631_v24 = vadd.f32 %v2687_v15, %v600_v23 }
 0x121   : > { %v643_v25 = vmax.f32 %v631_v24, 0.0  ;;  %v2477_v24 = vld [vmem:[%s3107_s3 + $0x80] sm:$0xff] }
 0x122   : > { %v669_v26 = vld [vmem:[#allocation2] sm:$0xff]  ;;  %1144 = vmatpush.bf16.msrb.mxu0 %v2477_v24 }
 0x123   : > { %655 = vst.msk [vmem:[#allocation2 + $0x8] sm:$0xff] %vm500_vm2, %v643_v25  ;;  %v533_v27 = vpop.f32.mrf.mxu0 }
 0x124   : > { %v602_v28 = vpop.f32.mrf.mxu1  ;;  %681 = vst.msk [vmem:[#allocation5] sm:$0xff] %vm500_vm2, %v669_v26 }
 0x125   : > { %v603_v29 = vadd.f32 %v602_v28, %v533_v27 }
 0x127   : > { %v632_v30 = vadd.f32 %v2687_v15, %v603_v29 }
 0x129   : > { %v644_v31 = vmax.f32 %v632_v30, 0.0 }
 0x12a   : > { %v767_v32 = vld [vmem:[#allocation2 + $0x2] sm:$0xff] }
 0x12b   : > { %v693_v33 = vld [vmem:[#allocation2 + $0x1] sm:$0xff]  ;;  %656 = vst.msk [vmem:[#allocation2 + $0x10] sm:$0xff] %vm500_vm2, %v644_v31  ;;  %791 = vrot.lane.b32.xlu2 %v767_v32, %s2541_s26  ;;  %v535_v35 = vpop.f32.mrf.mxu0 }
 0x12c   : > { %v670_v34 = vld [vmem:[#allocation2 + $0x8] sm:$0xff]  ;;  %717 = vrot.lane.b32.xlu1 %v693_v33, %s2542_s27  ;;  %v604_v36 = vpop.f32.mrf.mxu1 }
 0x12d   : > { %682 = vst.msk [vmem:[#allocation5 + $0x8] sm:$0xff] %vm500_vm2, %v670_v34  ;;  %v605_v37 = vadd.f32 %v604_v36, %v535_v35 }
 0x12f   : > { %v633_v38 = vadd.f32 %v2687_v15, %v605_v37 }
 0x131   : > { %v645_v39 = vmax.f32 %v633_v38, 0.0 }
 0x132   : > { %v768_v40 = vld [vmem:[#allocation2 + $0xa] sm:$0xff] }
 0x133   : > { %v694_v41 = vld [vmem:[#allocation2 + $0x9] sm:$0xff]  ;;  %657 = vst.msk [vmem:[#allocation2 + $0x18] sm:$0xff] %vm500_vm2, %v645_v39  ;;  %793 = vrot.lane.b32.xlu0 %v768_v40, %s2541_s26  ;;  %v538_v43 = vpop.f32.mrf.mxu0 }
 0x134   : > { %v671_v42 = vld [vmem:[#allocation2 + $0x10] sm:$0xff]  ;;  %719 = vrot.lane.b32.xlu2 %v694_v41, %s2542_s27  ;;  %v607_v44 = vpop.f32.mrf.mxu1 }
 0x135   : > { %683 = vst.msk [vmem:[#allocation5 + $0x10] sm:$0xff] %vm500_vm2, %v671_v42  ;;  %v608_v45 = vadd.f32 %v607_v44, %v538_v43  ;;  %v2476_v42 = vld [vmem:[%s3107_s3 + $0x78] sm:$0xff]  ;;  %v2466_v43 = vld [vmem:[%s3107_s3 + $0x28] sm:$0xff] }
 0x136   : > { %1145 = vmatpush.bf16.msrb.mxu0 %v2476_v42  ;;  %1032 = vmatpush.bf16.msra.mxu3 %v2466_v43 }
 0x137   : > { %v634_v46 = vadd.f32 %v2687_v15, %v608_v45  ;;  %v2465_v45 = vld [vmem:[%s3107_s3 + $0x20] sm:$0xff] }
 0x139   : > { %v646_v47 = vmax.f32 %v634_v46, 0.0 }
 0x13a   : > { %v695_v48 = vld [vmem:[#allocation2 + $0x11] sm:$0xff]  ;;  %1033 = vmatpush.bf16.msra.mxu3 %v2465_v45 }
 0x13b   : > { %v672_v49 = vld [vmem:[#allocation2 + $0x18] sm:$0xff]  ;;  %658 = vst.msk [vmem:[#allocation2 + $0x20] sm:$0xff] %vm500_vm2, %v646_v47  ;;  %721 = vrot.lane.b32.xlu0 %v695_v48, %s2542_s27  ;;  %v540_v50 = vpop.f32.mrf.mxu0 }
 0x13c   : > { %v609_v51 = vpop.f32.mrf.mxu1  ;;  %684 = vst.msk [vmem:[#allocation5 + $0x18] sm:$0xff] %vm500_vm2, %v672_v49  ;;  %v769_v0 = vld [vmem:[#allocation2 + $0x12] sm:$0xff] }
 0x13d   : > { %v610_v52 = vadd.f32 %v609_v51, %v540_v50 }
 0x13f   : > { %v635_v53 = vadd.f32 %v2687_v15, %v610_v52 }
 0x141   : > { %v647_v54 = vmax.f32 %v635_v53, 0.0  ;;  %v2475_v53 = vld [vmem:[%s3107_s3 + $0x70] sm:$0xff] }
 0x142   : > { %v770_v55 = vld [vmem:[#allocation2 + $0x1a] sm:$0xff]  ;;  %1146 = vmatpush.bf16.msrb.mxu0 %v2475_v53 }
 0x143   : > { %v696_v56 = vld [vmem:[#allocation2 + $0x19] sm:$0xff]  ;;  %659 = vst.msk [vmem:[#allocation2 + $0x28] sm:$0xff] %vm500_vm2, %v647_v54  ;;  %797 = vrot.lane.b32.xlu2 %v770_v55, %s2541_s26  ;;  %v543_v58 = vpop.f32.mrf.mxu0 }
 0x144   : > { %v673_v57 = vld [vmem:[#allocation2 + $0x20] sm:$0xff]  ;;  %723 = vrot.lane.b32.xlu1 %v696_v56, %s2542_s27  ;;  %v612_v59 = vpop.f32.mrf.mxu1  ;;  %v2464_v54 = vld [vmem:[%s3107_s3 + $0x18] sm:$0xff]  ;;  %v2463_v56 = vld [vmem:[%s3107_s3 + $0x10] sm:$0xff] }
 0x145   : > { %685 = vst.msk [vmem:[#allocation5 + $0x20] sm:$0xff] %vm500_vm2, %v673_v57  ;;  %v613_v60 = vadd.f32 %v612_v59, %v543_v58  ;;  %v778_v55 = vld [vmem:[#allocation2 + $0x5a] sm:$0x3]  ;;  %1034 = vmatpush.bf16.msra.mxu3 %v2464_v54  ;;  %v2462_v58 = vld [vmem:[%s3107_s3 + $0x8] sm:$0xff]  ;;  %v2461_v59 = vld [vmem:[%s3107_s3] sm:$0xff] }
 0x147   : > { %v636_v61 = vadd.f32 %v2687_v15, %v613_v60 }
 0x149   : > { %v648_v62 = vmax.f32 %v636_v61, 0.0  ;;  %1035 = vmatpush.bf16.msra.mxu3 %v2463_v56  ;;  %v2474_v61 = vld [vmem:[%s3107_s3 + $0x68] sm:$0xff] }
 0x14a   : > { %v697_v63 = vld [vmem:[#allocation2 + $0x21] sm:$0xff]  ;;  %1147 = vmatpush.bf16.msrb.mxu0 %v2474_v61 }
 0x14b   : > { %v674_v1 = vld [vmem:[#allocation2 + $0x28] sm:$0xff]  ;;  %660 = vst.msk [vmem:[#allocation2 + $0x30] sm:$0xff] %vm500_vm2, %v648_v62  ;;  %725 = vrot.lane.b32.xlu0 %v697_v63, %s2542_s27  ;;  %v545_v2 = vpop.f32.mrf.mxu0  ;;  %v2472_v62 = vld [vmem:[%s3107_s3 + $0x58] sm:$0xff]  ;;  %v2471_v63 = vld [vmem:[%s3107_s3 + $0x50] sm:$0xff] }
 0x14c   : > { %795 = vrot.lane.b32.xlu1 %v769_v0, %s2541_s26  ;;  %v614_v3 = vpop.f32.mrf.mxu1  ;;  %686 = vst.msk [vmem:[#allocation5 + $0x28] sm:$0xff] %vm500_vm2, %v674_v1  ;;  %v771_v9 = vld [vmem:[#allocation2 + $0x22] sm:$0xff]  ;;  %948 = vmatpush.bf16.msra.mxu2 %v2472_v62 }
 0x14d   : > { %v615_v4 = vadd.f32 %v614_v3, %v545_v2  ;;  %1036 = vmatpush.bf16.msra.mxu3 %v2462_v58  ;;  %v2470_v0 = vld [vmem:[%s3107_s3 + $0x48] sm:$0xff]  ;;  %v2469_v1 = vld [vmem:[%s3107_s3 + $0x40] sm:$0xff]  ;;  %v2468_v3 = vld [vmem:[%s3107_s3 + $0x38] sm:$0xff] }
 0x14f   : > { %v637_v5 = vadd.f32 %v2687_v15, %v615_v4  ;;  %v2467_v4 = vld [vmem:[%s3107_s3 + $0x30] sm:$0xff] }
 0x150   : > { %949 = vmatpush.bf16.msra.mxu2 %v2471_v63 }
 0x151   : > { %v649_v6 = vmax.f32 %v637_v5, 0.0  ;;  %1037 = vmatpush.bf16.msra.mxu3 %v2461_v59 }
 0x152   : > { %v772_v7 = vld [vmem:[#allocation2 + $0x2a] sm:$0xff] }
 0x153   : > { %v698_v8 = vld [vmem:[#allocation2 + $0x29] sm:$0xff]  ;;  %661 = vst.msk [vmem:[#allocation2 + $0x38] sm:$0xff] %vm500_vm2, %v649_v6  ;;  %801 = vrot.lane.b32.xlu0 %v772_v7, %s2541_s26  ;;  %v548_v11 = vpop.f32.mrf.mxu0  ;;  %v2473_v7 = vld [vmem:[%s3107_s3 + $0x60] sm:$0xff] }
 0x154   : > { %727 = vrot.lane.b32.xlu2 %v698_v8, %s2542_s27  ;;  %799 = vrot.lane.b32.xlu1 %v771_v9, %s2541_s26  ;;  %v617_v12 = vpop.f32.mrf.mxu1  ;;  %v675_v14 = vld [vmem:[#allocation2 + $0x30] sm:$0xff] }
 0x155   : > { %v618_v16 = vadd.f32 %v617_v12, %v548_v11  ;;  %687 = vst.msk [vmem:[#allocation5 + $0x30] sm:$0xff] %vm500_vm2, %v675_v14  ;;  %950 = vmatpush.bf16.msra.mxu2 %v2470_v0  ;;  %1148 = vmatpush.bf16.msrb.mxu0 %v2473_v7 }
 0x157   : > { %v638_v17 = vadd.f32 %v2687_v15, %v618_v16 }
 0x159   : > { %v650_v18 = vmax.f32 %v638_v17, 0.0  ;;  %951 = vmatpush.bf16.msra.mxu2 %v2469_v1 }
 0x15a   : > { %v773_v19 = vld [vmem:[#allocation2 + $0x32] sm:$0xff] }
 0x15b   : > { %v699_v20 = vld [vmem:[#allocation2 + $0x31] sm:$0xff]  ;;  %662 = vst.msk [vmem:[#allocation2 + $0x40] sm:$0xff] %vm500_vm2, %v650_v18  ;;  %v550_v22 = vpop.f32.mrf.mxu0 }
 0x15c   : > { %v676_v21 = vld [vmem:[#allocation2 + $0x38] sm:$0xff]  ;;  %803 = vrot.lane.b32.xlu2 %v773_v19, %s2541_s26  ;;  %729 = vrot.lane.b32.xlu1 %v699_v20, %s2542_s27  ;;  %v619_v23 = vpop.f32.mrf.mxu1 }
 0x15d   : > { %688 = vst.msk [vmem:[#allocation5 + $0x38] sm:$0xff] %vm500_vm2, %v676_v21  ;;  %v620_v25 = vadd.f32 %v619_v23, %v550_v22  ;;  %952 = vmatpush.bf16.msra.mxu2 %v2468_v3 }
 0x15f   : > { %v639_v26 = vadd.f32 %v2687_v15, %v620_v25 }
 0x161   : > { %v651_v27 = vmax.f32 %v639_v26, 0.0  ;;  %953 = vmatpush.bf16.msra.mxu2 %v2467_v4 }
 0x162   : > { %v700_v28 = vld [vmem:[#allocation2 + $0x39] sm:$0xff] }
 0x163   : > { %v774_v29 = vld [vmem:[#allocation2 + $0x3a] sm:$0xff]  ;;  %663 = vst.msk [vmem:[#allocation2 + $0x48] sm:$0xff] %vm500_vm2, %v651_v27  ;;  %731 = vrot.lane.b32.xlu0 %v700_v28, %s2542_s27  ;;  %v553_v31 = vpop.f32.mrf.mxu0 }
 0x164   : > { %v677_v30 = vld [vmem:[#allocation2 + $0x40] sm:$0xff]  ;;  %805 = vrot.lane.b32.xlu1 %v774_v29, %s2541_s26  ;;  %v622_v32 = vpop.f32.mrf.mxu1 }
 0x165   : > { %689 = vst.msk [vmem:[#allocation5 + $0x40] sm:$0xff] %vm500_vm2, %v677_v30  ;;  %v623_v33 = vadd.f32 %v622_v32, %v553_v31 }
 0x167   : > { %v640_v34 = vadd.f32 %v2687_v15, %v623_v33 }
 0x169   : > { %v652_v35 = vmax.f32 %v640_v34, 0.0 }
 0x16a   : > { %v775_v36 = vld [vmem:[#allocation2 + $0x42] sm:$0xff] }
 0x16b   : > { %v701_v37 = vld [vmem:[#allocation2 + $0x41] sm:$0xff]  ;;  %664 = vst.msk [vmem:[#allocation2 + $0x50] sm:$0xff] %vm500_vm2, %v652_v35  ;;  %807 = vrot.lane.b32.xlu0 %v775_v36, %s2541_s26  ;;  %v555_v39 = vpop.f32.mrf.mxu0 }
 0x16c   : > { %v678_v38 = vld [vmem:[#allocation2 + $0x48] sm:$0xff]  ;;  %733 = vrot.lane.b32.xlu2 %v701_v37, %s2542_s27  ;;  %v624_v40 = vpop.f32.mrf.mxu1 }
 0x16d   : > { %690 = vst.msk [vmem:[#allocation5 + $0x48] sm:$0xff] %vm500_vm2, %v678_v38  ;;  %v625_v41 = vadd.f32 %v624_v40, %v555_v39 }
 0x16f   : > { %v641_v44 = vadd.f32 %v2687_v15, %v625_v41 }
 0x171   : > { %v653_v46 = vmax.f32 %v641_v44, 0.0 }
 0x172   : > { %v776_v47 = vld [vmem:[#allocation2 + $0x4a] sm:$0xff] }
 0x173   : > { %v702_v48 = vld [vmem:[#allocation2 + $0x49] sm:$0xff]  ;;  %666 = vst.msk [vmem:[#allocation2 + $0x58] sm:$0x3] %vm665_vm5, %v653_v46 }
 0x174   : > { %v679_v49 = vld [vmem:[#allocation2 + $0x50] sm:$0xff]  ;;  %809 = vrot.lane.b32.xlu2 %v776_v47, %s2541_s26  ;;  %735 = vrot.lane.b32.xlu1 %v702_v48, %s2542_s27 }
 0x175   : > { %691 = vst.msk [vmem:[#allocation5 + $0x50] sm:$0xff] %vm500_vm2, %v679_v49 }
 0x17a   : > { %v703_v15 = vld [vmem:[#allocation2 + $0x51] sm:$0xff]  ;;  %v704_v50 = vld [vmem:[#allocation2 + $0x59] sm:$0x3] }
 0x17b   : > { %v777_v51 = vld [vmem:[#allocation2 + $0x52] sm:$0xff]  ;;  %737 = vrot.lane.b32.xlu0 %v703_v15, %s2542_s27 }
 0x17c   : > { %739 = vrot.lane.b32.xlu2 %v704_v50, %s2542_s27  ;;  %v680_v52 = vld [vmem:[#allocation2 + $0x58] sm:$0x3]  ;;  %811 = vrot.lane.b32.xlu1 %v777_v51, %s2541_s26 }
 0x17d   : > { %692 = vst.msk [vmem:[#allocation5 + $0x58] sm:$0x3] %vm665_vm5, %v680_v52 }
 0x183   : > { %813 = vrot.lane.b32.xlu0 %v778_v55, %s2541_s26 }
 0x185   : > { %v792_v57 = vpop.permute.xlu2 %791 }
 0x18e   : > { %v720_v60 = vpop.permute.xlu2 %719 }
 0x18f   : > { %755 = vst.msk [vmem:[#allocation5 + $0x8] sm:$0xff] %vm753_vm6, %v720_v60 }
 0x19d   : > { %v798_v5 = vpop.permute.xlu2 %797 }
 0x19e   : > { %v718_v2 = vpop.permute.xlu1 %717 }
 0x19f   : > { %754 = vst.msk [vmem:[#allocation5] sm:$0xff] %vm753_vm6, %v718_v2 }
 0x1a0   : > { %828 = vst.msk [vmem:[#allocation5] sm:$0xff] %vm827_vm7, %v792_v57 }
 0x1a5   : > { %v794_v6 = vpop.permute.xlu0 %793 }
 0x1a6   : > { %829 = vst.msk [vmem:[#allocation5 + $0x8] sm:$0xff] %vm827_vm7, %v794_v6 }
 0x1a7   : > { %v841_v10 = vld [vmem:[#allocation5] sm:$0xff] }
 0x1ad   : > { %v722_v8 = vpop.permute.xlu0 %721  ;;  %v842_v11 = vld [vmem:[#allocation5 + $0x8] sm:$0xff] }
 0x1ae   : > { %v728_v9 = vpop.permute.xlu2 %727  ;;  %756 = vst.msk [vmem:[#allocation5 + $0x10] sm:$0xff] %vm753_vm6, %v722_v8  ;;  %v850_v12 = vpack.c.bf16 %v842_v11, %v841_v10  ;;  %v2848_v10 = vld [vmem:[%s3108_s4] ss:$0 sm:$0xff] }
 0x1af   : > { %759 = vst.msk [vmem:[#allocation5 + $0x28] sm:$0xff] %vm753_vm6, %v728_v9 }
 0x1b0   : > { %2198 = vmatmul.msk.bf16.vlgmr.msra.gmra.mxu3 %vm930_vm8, %v850_v12 }
 0x1b6   : > { %v724_v13 = vpop.permute.xlu1 %723  ;;  %v804_v14 = vpop.permute.xlu2 %803 }
 0x1b7   : > { %757 = vst.msk [vmem:[#allocation5 + $0x18] sm:$0xff] %vm753_vm6, %v724_v13 }
 0x1b8   : > { %831 = vst.msk [vmem:[#allocation5 + $0x18] sm:$0xff] %vm827_vm7, %v798_v5 }
 0x1bd   : > { %v726_v16 = vpop.permute.xlu0 %725 }
 0x1be   : > { %v796_v17 = vpop.permute.xlu1 %795  ;;  %758 = vst.msk [vmem:[#allocation5 + $0x20] sm:$0xff] %vm753_vm6, %v726_v16 }
 0x1bf   : > { %830 = vst.msk [vmem:[#allocation5 + $0x10] sm:$0xff] %vm827_vm7, %v796_v17  ;;  %v844_v25 = vld [vmem:[#allocation5 + $0x18] sm:$0xff] }
 0x1c5   : > { %v802_v18 = vpop.permute.xlu0 %801 }
 0x1c6   : > { %v734_v19 = vpop.permute.xlu2 %733  ;;  %v867_v20 = vld [vmem:[#allocation5 + $0xa] sm:$0xff]  ;;  %v868_v21 = vld [vmem:[#allocation5 + $0x12] sm:$0xff]  ;;  %833 = vst.msk [vmem:[#allocation5 + $0x28] sm:$0xff] %vm827_vm7, %v802_v18  ;;  %v800_v22 = vpop.permute.xlu1 %799 }
 0x1c7   : > { %762 = vst.msk [vmem:[#allocation5 + $0x40] sm:$0xff] %vm753_vm6, %v734_v19  ;;  %v876_v23 = vpack.c.bf16 %v868_v21, %v867_v20  ;;  %v843_v24 = vld [vmem:[#allocation5 + $0x10] sm:$0xff] }
 0x1c8   : > { %832 = vst.msk [vmem:[#allocation5 + $0x20] sm:$0xff] %vm827_vm7, %v800_v22  ;;  %v851_v26 = vpack.c.bf16 %v844_v25, %v843_v24  ;;  %v1063_v29 = vld [vmem:[#allocation5 + $0x14] sm:$0xff] }
 0x1c9   : > { %2169 = vmatmul.msk.bf16.vlgmr.msra.gmra.mxu2 %vm930_vm8, %v876_v23 }
 0x1ca   : > { %2199 = vmatmul.msk.bf16.gmra.mxu3 %vm930_vm8, %v851_v26 }
 0x1cd   : > { %v846_v37 = vld [vmem:[#allocation5 + $0x28] sm:$0xff] }
 0x1ce   : > { %v810_v27 = vpop.permute.xlu2 %809  ;;  %v730_v28 = vpop.permute.xlu1 %729 }
 0x1cf   : > { %v1064_v30 = vld [vmem:[#allocation5 + $0x1c] sm:$0xff]  ;;  %760 = vst.msk [vmem:[#allocation5 + $0x30] sm:$0xff] %vm753_vm6, %v730_v28  ;;  %v1065_v43 = vld [vmem:[#allocation5 + $0x24] sm:$0xff] }
 0x1d0   : > { %834 = vst.msk [vmem:[#allocation5 + $0x30] sm:$0xff] %vm827_vm7, %v804_v14  ;;  %v1072_v31 = vpack.c.bf16 %v1064_v30, %v1063_v29  ;;  %v869_v32 = vld [vmem:[#allocation5 + $0x1a] sm:$0xff]  ;;  %v870_v33 = vld [vmem:[#allocation5 + $0x22] sm:$0xff] }
 0x1d1   : > { %v845_v36 = vld [vmem:[#allocation5 + $0x20] sm:$0xff]  ;;  %v877_v39 = vpack.c.bf16 %v870_v33, %v869_v32 }
 0x1d2   : > { %2239 = vmatmul.msk.bf16.vlgmr.msrb.gmra.mxu0 %vm930_vm8, %v1072_v31  ;;  %v852_v40 = vpack.c.bf16 %v846_v37, %v845_v36 }
 0x1d5   : > { %v732_v34 = vpop.permute.xlu0 %731 }
 0x1d6   : > { %v740_v35 = vpop.permute.xlu2 %739  ;;  %761 = vst.msk [vmem:[#allocation5 + $0x38] sm:$0xff] %vm753_vm6, %v732_v34  ;;  %v806_v38 = vpop.permute.xlu1 %805 }
 0x1d7   : > { %766 = vst.msk [vmem:[#allocation5 + $0x58] sm:$0x3] %vm765_vm9, %v740_v35  ;;  %v1066_v41 = vld [vmem:[#allocation5 + $0x2c] sm:$0xff] }
 0x1d8   : > { %835 = vst.msk [vmem:[#allocation5 + $0x38] sm:$0xff] %vm827_vm7, %v806_v38  ;;  %v1073_v44 = vpack.c.bf16 %v1066_v41, %v1065_v43  ;;  %v871_v48 = vld [vmem:[#allocation5 + $0x2a] sm:$0xff] }
 0x1d9   : > { %2170 = vmatmul.msk.bf16.gmra.mxu2 %vm930_vm8, %v877_v39  ;;  %v847_v15 = vld [vmem:[#allocation5 + $0x30] sm:$0xff] }
 0x1da   : > { %2200 = vmatmul.msk.bf16.gmra.mxu3 %vm930_vm8, %v852_v40 }
 0x1dd   : > { %v808_v42 = vpop.permute.xlu0 %807 }
 0x1de   : > { %836 = vst.msk [vmem:[#allocation5 + $0x40] sm:$0xff] %vm827_vm7, %v808_v42 }
 0x1df   : > { %v872_v45 = vld [vmem:[#allocation5 + $0x32] sm:$0xff] }
 0x1e0   : > { %v848_v47 = vld [vmem:[#allocation5 + $0x38] sm:$0xff]  ;;  %v878_v49 = vpack.c.bf16 %v872_v45, %v871_v48 }
 0x1e1   : > { %v853_v50 = vpack.c.bf16 %v848_v47, %v847_v15  ;;  %v1067_v54 = vld [vmem:[#allocation5 + $0x34] sm:$0xff] }
 0x1e2   : > { %2240 = vmatmul.msk.bf16.gmra.mxu0 %vm930_vm8, %v1073_v44 }
 0x1e5   : > { %v1068_v52 = vld [vmem:[#allocation5 + $0x3c] sm:$0xff] }
 0x1e6   : > { %v736_v46 = vpop.permute.xlu1 %735  ;;  %v1074_v55 = vpack.c.bf16 %v1068_v52, %v1067_v54  ;;  %v849_v58 = vld [vmem:[#allocation5 + $0x40] sm:$0x3f] }
 0x1e7   : > { %763 = vst.msk [vmem:[#allocation5 + $0x48] sm:$0xff] %vm753_vm6, %v736_v46  ;;  %v873_v59 = vld [vmem:[#allocation5 + $0x3a] sm:$0xff]  ;;  %v854_v61 = vpack.c.bf16 %v849_v58, %v849_v58 }
 0x1e8   : > { %837 = vst.msk [vmem:[#allocation5 + $0x48] sm:$0xff] %vm827_vm7, %v810_v27 }
 0x1e9   : > { %2171 = vmatmul.msk.bf16.gmra.mxu2 %vm930_vm8, %v878_v49 }
 0x1ea   : > { %2201 = vmatmul.msk.bf16.gmra.mxu3 %vm930_vm8, %v853_v50 }
 0x1ed   : > { %v738_v51 = vpop.permute.xlu0 %737 }
 0x1ee   : > { %764 = vst.msk [vmem:[#allocation5 + $0x50] sm:$0xff] %vm753_vm6, %v738_v51  ;;  %v812_v53 = vpop.permute.xlu1 %811 }
 0x1ef   : > { %838 = vst.msk [vmem:[#allocation5 + $0x50] sm:$0xff] %vm827_vm7, %v812_v53  ;;  %v874_v56 = vld [vmem:[#allocation5 + $0x42] sm:$0xff]  ;;  %v875_v1 = vld [vmem:[#allocation5 + $0x4a] sm:$0x3f] }
 0x1f0   : > { %v879_v60 = vpack.c.bf16 %v874_v56, %v873_v59  ;;  %v1069_v63 = vld [vmem:[#allocation5 + $0x44] sm:$0xff]  ;;  %v880_v2 = vpack.c.bf16 %v875_v1, %v875_v1 }
 0x1f2   : > { %2241 = vmatmul.msk.bf16.gmra.mxu0 %vm930_vm8, %v1074_v55 }
 0x1f5   : > { %v814_v57 = vpop.permute.xlu0 %813 }
 0x1f6   : > { %840 = vst.msk [vmem:[#allocation5 + $0x58] sm:$0x3] %vm839_vm10, %v814_v57  ;;  %v1070_v62 = vld [vmem:[#allocation5 + $0x4c] sm:$0xff] }
 0x1f7   : > { %v1075_v0 = vpack.c.bf16 %v1070_v62, %v1069_v63 }
 0x1f9   : > { %2172 = vmatmul.msk.bf16.gmra.mxu2 %vm930_vm8, %v879_v60 }
 0x1fa   : > { %2202 = vmatmul.msk.bf16.gmra.mxu3 %vm930_vm8, %v854_v61 }
 0x1fd   : > { %v1071_v3 = vld [vmem:[#allocation5 + $0x54] sm:$0x3f] }
 0x1fe   : > { %v1076_v4 = vpack.c.bf16 %v1071_v3, %v1071_v3 }
 0x202   : > { %2242 = vmatmul.msk.bf16.gmra.mxu0 %vm930_vm8, %v1075_v0 }
 0x209   : > { %2173 = vmatmul.msk.bf16.gmra.mxu2 %vm930_vm8, %v880_v2 }
 0x212   : > { %2243 = vmatmul.msk.bf16.gmra.mxu0 %vm930_vm8, %v1076_v4 }
 0x233   : > { %v1039_v5 = vpop.f32.mrf.mxu3 }
 0x23b   : > { %v1041_v6 = vpop.f32.mrf.mxu3 }
 0x24c   : > { %v955_v7 = vpop.f32.mrf.mxu2 }
 0x24d   : > { %v1040_v8 = vadd.f32 %v1039_v5, %v955_v7  ;;  %v1044_v9 = vpop.f32.mrf.mxu3 }
 0x24f   : > { %v1150_v11 = vpop.f32.mrf.mxu0 }
 0x250   : > { %v1174_v12 = vadd.f32 %v1150_v11, %v1040_v8 }
 0x252   : > { %v1186_v13 = vadd.f32 %v2848_v10, %v1174_v12 }
 0x254   : > { %v1195_v14 = vmax.f32 %v1186_v13, 0.0  ;;  %v957_v16 = vpop.f32.mrf.mxu2  ;;  %v2490_v13 = vld [vmem:[%s3109_s5 + $0x58] sm:$0xff] }
 0x255   : > { %v1042_v17 = vadd.f32 %v1041_v6, %v957_v16  ;;  %v1046_v18 = vpop.f32.mrf.mxu3  ;;  %v2496_v16 = vld [vmem:[%s3109_s5 + $0x88] sm:$0xff]  ;;  %1441 = vmatpush.bf16.msrb.mxu1 %v2490_v13 }
 0x256   : > { %1204 = vst.msk [vmem:[#allocation3] sm:$0xff] %vm500_vm2, %v1195_v14  ;;  %v2484_v14 = vld [vmem:[%s3109_s5 + $0x28] sm:$0xff]  ;;  %1617 = vmatpush.bf16.msrb.mxu3 %v2496_v16 }
 0x257   : > { %v1152_v19 = vpop.f32.mrf.mxu0  ;;  %1517 = vmatpush.bf16.msrb.mxu2 %v2484_v14 }
 0x258   : > { %v1175_v20 = vadd.f32 %v1152_v19, %v1042_v17  ;;  %v2483_v19 = vld [vmem:[%s3109_s5 + $0x20] sm:$0xff] }
 0x25a   : > { %v1187_v21 = vadd.f32 %v2848_v10, %v1175_v20 }
 0x25b   : > { %1518 = vmatpush.bf16.msrb.mxu2 %v2483_v19 }
 0x25c   : > { %v1196_v22 = vmax.f32 %v1187_v21, 0.0  ;;  %v960_v23 = vpop.f32.mrf.mxu2 }
 0x25d   : > { %v1045_v24 = vadd.f32 %v1044_v9, %v960_v23  ;;  %v1049_v25 = vpop.f32.mrf.mxu3  ;;  %v1216_v26 = vld [vmem:[#allocation3] sm:$0xff] }
 0x25e   : > { %1205 = vst.msk [vmem:[#allocation3 + $0x8] sm:$0xff] %vm500_vm2, %v1196_v22 }
 0x25f   : > { %v1155_v27 = vpop.f32.mrf.mxu0  ;;  %1225 = vst.msk [vmem:[#allocation5] sm:$0xff] %vm500_vm2, %v1216_v26 }
 0x260   : > { %v1176_v28 = vadd.f32 %v1155_v27, %v1045_v24 }
 0x262   : > { %v1188_v29 = vadd.f32 %v2848_v10, %v1176_v28 }
 0x264   : > { %v1197_v30 = vmax.f32 %v1188_v29, 0.0  ;;  %v962_v31 = vpop.f32.mrf.mxu2 }
 0x265   : > { %v1047_v32 = vadd.f32 %v1046_v18, %v962_v31  ;;  %v1051_v33 = vpop.f32.mrf.mxu3  ;;  %v1289_v34 = vld [vmem:[#allocation3 + $0x2] sm:$0xff] }
 0x266   : > { %v1234_v35 = vld [vmem:[#allocation3 + $0x1] sm:$0xff]  ;;  %1206 = vst.msk [vmem:[#allocation3 + $0x10] sm:$0xff] %vm500_vm2, %v1197_v30  ;;  %1307 = vrot.lane.b32.xlu0 %v1289_v34, %s2541_s26 }
 0x267   : > { %v1217_v36 = vld [vmem:[#allocation3 + $0x8] sm:$0xff]  ;;  %1252 = vrot.lane.b32.xlu1 %v1234_v35, %s2542_s27  ;;  %v1157_v37 = vpop.f32.mrf.mxu0 }
 0x268   : > { %1226 = vst.msk [vmem:[#allocation5 + $0x8] sm:$0xff] %vm500_vm2, %v1217_v36  ;;  %v1177_v38 = vadd.f32 %v1157_v37, %v1047_v32  ;;  %v2489_v18 = vld [vmem:[%s3109_s5 + $0x50] sm:$0xff] }
 0x269   : > { %1442 = vmatpush.bf16.msrb.mxu1 %v2489_v18 }
 0x26a   : > { %v1189_v39 = vadd.f32 %v2848_v10, %v1177_v38 }
 0x26c   : > { %v1198_v40 = vmax.f32 %v1189_v39, 0.0  ;;  %v965_v41 = vpop.f32.mrf.mxu2 }
 0x26d   : > { %v1218_v42 = vld [vmem:[#allocation3 + $0x10] sm:$0xff]  ;;  %v1050_v43 = vadd.f32 %v1049_v25, %v965_v41  ;;  %v1054_v44 = vpop.f32.mrf.mxu3  ;;  %v2495_v41 = vld [vmem:[%s3109_s5 + $0x80] sm:$0xff] }
 0x26e   : > { %v1235_v45 = vld [vmem:[#allocation3 + $0x9] sm:$0xff]  ;;  %1227 = vst.msk [vmem:[#allocation5 + $0x10] sm:$0xff] %vm500_vm2, %v1218_v42  ;;  %v2488_v42 = vld [vmem:[%s3109_s5 + $0x48] sm:$0xff]  ;;  %1618 = vmatpush.bf16.msrb.mxu3 %v2495_v41 }
 0x26f   : > { %v1290_v46 = vld [vmem:[#allocation3 + $0xa] sm:$0xff]  ;;  %1254 = vrot.lane.b32.xlu2 %v1235_v45, %s2542_s27  ;;  %1207 = vst.msk [vmem:[#allocation3 + $0x18] sm:$0xff] %vm500_vm2, %v1198_v40  ;;  %v1160_v47 = vpop.f32.mrf.mxu0  ;;  %1443 = vmatpush.bf16.msrb.mxu1 %v2488_v42  ;;  %v2487_v45 = vld [vmem:[%s3109_s5 + $0x40] sm:$0xff] }
 0x270   : > { %1309 = vrot.lane.b32.xlu1 %v1290_v46, %s2541_s26  ;;  %v1178_v48 = vadd.f32 %v1160_v47, %v1050_v43  ;;  %v2482_v43 = vld [vmem:[%s3109_s5 + $0x18] sm:$0xff]  ;;  %v2481_v46 = vld [vmem:[%s3109_s5 + $0x10] sm:$0xff] }
 0x271   : > { %1519 = vmatpush.bf16.msrb.mxu2 %v2482_v43  ;;  %v2493_v47 = vld [vmem:[%s3109_s5 + $0x70] sm:$0xff] }
 0x272   : > { %v1190_v49 = vadd.f32 %v2848_v10, %v1178_v48  ;;  %v2480_v48 = vld [vmem:[%s3109_s5 + $0x8] sm:$0xff] }
 0x273   : > { %1444 = vmatpush.bf16.msrb.mxu1 %v2487_v45 }
 0x274   : > { %v1199_v15 = vmax.f32 %v1190_v49, 0.0  ;;  %v967_v50 = vpop.f32.mrf.mxu2  ;;  %v2479_v49 = vld [vmem:[%s3109_s5] sm:$0xff] }
 0x275   : > { %v1052_v51 = vadd.f32 %v1051_v33, %v967_v50  ;;  %v1056_v52 = vpop.f32.mrf.mxu3  ;;  %1520 = vmatpush.bf16.msrb.mxu2 %v2481_v46  ;;  %v2486_v50 = vld [vmem:[%s3109_s5 + $0x38] sm:$0xff] }
 0x276   : > { %v1219_v53 = vld [vmem:[#allocation3 + $0x18] sm:$0xff]  ;;  %1208 = vst.msk [vmem:[#allocation3 + $0x20] sm:$0xff] %vm500_vm2, %v1199_v15 }
 0x277   : > { %v1236_v54 = vld [vmem:[#allocation3 + $0x11] sm:$0xff]  ;;  %1228 = vst.msk [vmem:[#allocation5 + $0x18] sm:$0xff] %vm500_vm2, %v1219_v53  ;;  %v1162_v55 = vpop.f32.mrf.mxu0  ;;  %1445 = vmatpush.bf16.msrb.mxu1 %v2486_v50 }
 0x278   : > { %1256 = vrot.lane.b32.xlu2 %v1236_v54, %s2542_s27  ;;  %v1179_v56 = vadd.f32 %v1162_v55, %v1052_v51  ;;  %v1291_v0 = vld [vmem:[#allocation3 + $0x12] sm:$0xff] }
 0x279   : > { %1521 = vmatpush.bf16.msrb.mxu2 %v2480_v48 }
 0x27a   : > { %v1191_v57 = vadd.f32 %v2848_v10, %v1179_v56  ;;  %v2491_v56 = vld [vmem:[%s3109_s5 + $0x60] sm:$0xff] }
 0x27c   : > { %v1200_v58 = vmax.f32 %v1191_v57, 0.0  ;;  %v970_v59 = vpop.f32.mrf.mxu2  ;;  %v2485_v57 = vld [vmem:[%s3109_s5 + $0x30] sm:$0xff] }
 0x27d   : > { %v1220_v60 = vld [vmem:[#allocation3 + $0x20] sm:$0xff]  ;;  %v1055_v61 = vadd.f32 %v1054_v44, %v970_v59  ;;  %v1059_v62 = vpop.f32.mrf.mxu3  ;;  %v2494_v44 = vld [vmem:[%s3109_s5 + $0x78] sm:$0xff]  ;;  %1522 = vmatpush.bf16.msrb.mxu2 %v2479_v49  ;;  %1446 = vmatpush.bf16.msrb.mxu1 %v2485_v57 }
 0x27e   : > { %v1237_v63 = vld [vmem:[#allocation3 + $0x19] sm:$0xff]  ;;  %1229 = vst.msk [vmem:[#allocation5 + $0x20] sm:$0xff] %vm500_vm2, %v1220_v60  ;;  %1619 = vmatpush.bf16.msrb.mxu3 %v2494_v44 }
 0x27f   : > { %1258 = vrot.lane.b32.xlu0 %v1237_v63, %s2542_s27  ;;  %1209 = vst.msk [vmem:[#allocation3 + $0x28] sm:$0xff] %vm500_vm2, %v1200_v58  ;;  %v1165_v1 = vpop.f32.mrf.mxu0  ;;  %v1292_v8 = vld [vmem:[#allocation3 + $0x1a] sm:$0xff] }
 0x280   : > { %1311 = vrot.lane.b32.xlu2 %v1291_v0, %s2541_s26  ;;  %v1180_v2 = vadd.f32 %v1165_v1, %v1055_v61 }
 0x282   : > { %v1192_v3 = vadd.f32 %v2848_v10, %v1180_v2  ;;  %1620 = vmatpush.bf16.msrb.mxu3 %v2493_v47  ;;  %v2980_v47 = vld [vmem:[%s3110_s6] ss:$0 sm:$0xff] }
 0x284   : > { %v1201_v4 = vmax.f32 %v1192_v3, 0.0  ;;  %v972_v5 = vpop.f32.mrf.mxu2 }
 0x285   : > { %v1057_v6 = vadd.f32 %v1056_v52, %v972_v5  ;;  %v1061_v7 = vpop.f32.mrf.mxu3  ;;  %v2492_v52 = vld [vmem:[%s3109_s5 + $0x68] sm:$0xff] }
 0x286   : > { %v1221_v9 = vld [vmem:[#allocation3 + $0x28] sm:$0xff]  ;;  %1210 = vst.msk [vmem:[#allocation3 + $0x30] sm:$0xff] %vm500_vm2, %v1201_v4  ;;  %1621 = vmatpush.bf16.msrb.mxu3 %v2492_v52 }
 0x287   : > { %1313 = vrot.lane.b32.xlu0 %v1292_v8, %s2541_s26  ;;  %v1238_v11 = vld [vmem:[#allocation3 + $0x21] sm:$0xff]  ;;  %1230 = vst.msk [vmem:[#allocation5 + $0x28] sm:$0xff] %vm500_vm2, %v1221_v9  ;;  %v1167_v12 = vpop.f32.mrf.mxu0 }
 0x288   : > { %1260 = vrot.lane.b32.xlu1 %v1238_v11, %s2542_s27  ;;  %v1181_v17 = vadd.f32 %v1167_v12, %v1057_v6  ;;  %v1293_v26 = vld [vmem:[#allocation3 + $0x22] sm:$0xff] }
 0x28a   : > { %v1193_v20 = vadd.f32 %v2848_v10, %v1181_v17  ;;  %1622 = vmatpush.bf16.msrb.mxu3 %v2491_v56 }
 0x28c   : > { %v1202_v21 = vmax.f32 %v1193_v20, 0.0  ;;  %v975_v22 = vpop.f32.mrf.mxu2 }
 0x28d   : > { %v1222_v23 = vld [vmem:[#allocation3 + $0x30] sm:$0xff]  ;;  %v1060_v24 = vadd.f32 %v1059_v62, %v975_v22 }
 0x28e   : > { %v1239_v25 = vld [vmem:[#allocation3 + $0x29] sm:$0xff]  ;;  %1231 = vst.msk [vmem:[#allocation5 + $0x30] sm:$0xff] %vm500_vm2, %v1222_v23 }
 0x28f   : > { %1262 = vrot.lane.b32.xlu2 %v1239_v25, %s2542_s27  ;;  %1211 = vst.msk [vmem:[#allocation3 + $0x38] sm:$0xff] %vm500_vm2, %v1202_v21  ;;  %v1170_v27 = vpop.f32.mrf.mxu0  ;;  %v1294_v35 = vld [vmem:[#allocation3 + $0x2a] sm:$0xff] }
 0x290   : > { %1315 = vrot.lane.b32.xlu1 %v1293_v26, %s2541_s26  ;;  %v1182_v28 = vadd.f32 %v1170_v27, %v1060_v24 }
 0x292   : > { %v1194_v29 = vadd.f32 %v2848_v10, %v1182_v28 }
 0x294   : > { %v1203_v30 = vmax.f32 %v1194_v29, 0.0  ;;  %v977_v31 = vpop.f32.mrf.mxu2 }
 0x296   : > { %v1223_v32 = vld [vmem:[#allocation3 + $0x38] sm:$0xff]  ;;  %1213 = vst.msk [vmem:[#allocation3 + $0x40] sm:$0x3f] %vm1212_vm11, %v1203_v30 }
 0x297   : > { %v1295_v33 = vld [vmem:[#allocation3 + $0x32] sm:$0xff]  ;;  %1232 = vst.msk [vmem:[#allocation5 + $0x38] sm:$0xff] %vm500_vm2, %v1223_v32  ;;  %v1172_v36 = vpop.f32.mrf.mxu0 }
 0x298   : > { %v1240_v34 = vld [vmem:[#allocation3 + $0x31] sm:$0xff]  ;;  %1319 = vrot.lane.b32.xlu2 %v1295_v33, %s2541_s26  ;;  %1317 = vrot.lane.b32.xlu1 %v1294_v35, %s2541_s26 }
 0x299   : > { %1264 = vrot.lane.b32.xlu0 %v1240_v34, %s2542_s27 }
 0x29d   : > { %v1224_v37 = vld [vmem:[#allocation3 + $0x40] sm:$0x3f] }
 0x29e   : > { %v1296_v10 = vld [vmem:[#allocation3 + $0x3a] sm:$0xff]  ;;  %1233 = vst.msk [vmem:[#allocation5 + $0x40] sm:$0x3f] %vm1212_vm11, %v1224_v37  ;;  %v1297_v40 = vld [vmem:[#allocation3 + $0x42] sm:$0x3f] }
 0x29f   : > { %v1241_v38 = vld [vmem:[#allocation3 + $0x39] sm:$0xff]  ;;  %v1242_v39 = vld [vmem:[#allocation3 + $0x41] sm:$0x3f] }
 0x2a0   : > { %1321 = vrot.lane.b32.xlu2 %v1296_v10, %s2541_s26  ;;  %1268 = vrot.lane.b32.xlu1 %v1242_v39, %s2542_s27 }
 0x2a1   : > { %1266 = vrot.lane.b32.xlu0 %v1241_v38, %s2542_s27 }
 0x2a9   : > { %1323 = vrot.lane.b32.xlu0 %v1297_v40, %s2541_s26 }
 0x2c9   : > { %v1255_v15 = vpop.permute.xlu2 %1254 }
 0x2ca   : > { %1280 = vst.msk [vmem:[#allocation5 + $0x8] sm:$0xff] %vm753_vm6, %v1255_v15 }
 0x2d2   : > { %v1257_v51 = vpop.permute.xlu2 %1256 }
 0x2d3   : > { %1281 = vst.msk [vmem:[#allocation5 + $0x10] sm:$0xff] %vm753_vm6, %v1257_v51 }
 0x2d8   : > { %v1308_v53 = vpop.permute.xlu0 %1307 }
 0x2d9   : > { %v1253_v54 = vpop.permute.xlu1 %1252 }
 0x2da   : > { %v1312_v55 = vpop.permute.xlu2 %1311  ;;  %1279 = vst.msk [vmem:[#allocation5] sm:$0xff] %vm753_vm6, %v1253_v54 }
 0x2db   : > { %1336 = vst.msk [vmem:[#allocation5 + $0x10] sm:$0xff] %vm827_vm7, %v1312_v55 }
 0x2dc   : > { %1334 = vst.msk [vmem:[#allocation5] sm:$0xff] %vm827_vm7, %v1308_v53 }
 0x2e2   : > { %v1310_v58 = vpop.permute.xlu1 %1309  ;;  %v1346_v2 = vld [vmem:[#allocation5 + $0x10] sm:$0xff] }
 0x2e3   : > { %1335 = vst.msk [vmem:[#allocation5 + $0x8] sm:$0xff] %vm827_vm7, %v1310_v58  ;;  %v1344_v60 = vld [vmem:[#allocation5] sm:$0xff] }
 0x2e9   : > { %v1263_v59 = vpop.permute.xlu2 %1262 }
 0x2ea   : > { %v1345_v61 = vld [vmem:[#allocation5 + $0x8] sm:$0xff]  ;;  %1284 = vst.msk [vmem:[#allocation5 + $0x28] sm:$0xff] %vm753_vm6, %v1263_v59 }
 0x2eb   : > { %v1351_v62 = vpack.c.bf16 %v1345_v61, %v1344_v60  ;;  %v1367_v3 = vld [vmem:[#allocation5 + $0xa] sm:$0xff] }
 0x2ed   : > { %2308 = vmatmul.msk.bf16.vlgmr.msrb.gmra.mxu2 %vm930_vm8, %v1351_v62 }
 0x2f1   : > { %v1259_v63 = vpop.permute.xlu0 %1258 }
 0x2f2   : > { %1282 = vst.msk [vmem:[#allocation5 + $0x18] sm:$0xff] %vm753_vm6, %v1259_v63  ;;  %v1320_v9 = vpop.permute.xlu2 %1319 }
 0x2f9   : > { %v1314_v0 = vpop.permute.xlu0 %1313 }
 0x2fa   : > { %1337 = vst.msk [vmem:[#allocation5 + $0x18] sm:$0xff] %vm827_vm7, %v1314_v0  ;;  %v1261_v1 = vpop.permute.xlu1 %1260  ;;  %v1322_v18 = vpop.permute.xlu2 %1321 }
 0x2fb   : > { %1283 = vst.msk [vmem:[#allocation5 + $0x20] sm:$0xff] %vm753_vm6, %v1261_v1 }
 0x301   : > { %v1368_v4 = vld [vmem:[#allocation5 + $0x12] sm:$0xff] }
 0x302   : > { %v1347_v5 = vld [vmem:[#allocation5 + $0x18] sm:$0xff]  ;;  %v1316_v6 = vpop.permute.xlu1 %1315  ;;  %v1374_v7 = vpack.c.bf16 %v1368_v4, %v1367_v3 }
 0x303   : > { %v1352_v8 = vpack.c.bf16 %v1347_v5, %v1346_v2  ;;  %1338 = vst.msk [vmem:[#allocation5 + $0x20] sm:$0xff] %vm827_vm7, %v1316_v6  ;;  %v1543_v12 = vld [vmem:[#allocation5 + $0x14] sm:$0xff] }
 0x304   : > { %2280 = vmatmul.msk.bf16.vlgmr.msrb.gmra.mxu1 %vm930_vm8, %v1374_v7 }
 0x305   : > { %2309 = vmatmul.msk.bf16.gmra.mxu2 %vm930_vm8, %v1352_v8 }
 0x30a   : > { %v1544_v13 = vld [vmem:[#allocation5 + $0x1c] sm:$0xff]  ;;  %v1318_v14 = vpop.permute.xlu1 %1317 }
 0x30b   : > { %v1265_v11 = vpop.permute.xlu0 %1264  ;;  %v1550_v16 = vpack.c.bf16 %v1544_v13, %v1543_v12  ;;  %1339 = vst.msk [vmem:[#allocation5 + $0x28] sm:$0xff] %vm827_vm7, %v1318_v14  ;;  %v1369_v20 = vld [vmem:[#allocation5 + $0x1a] sm:$0xff] }
 0x30c   : > { %1285 = vst.msk [vmem:[#allocation5 + $0x30] sm:$0xff] %vm753_vm6, %v1265_v11  ;;  %v1348_v22 = vld [vmem:[#allocation5 + $0x20] sm:$0xff] }
 0x30d   : > { %1340 = vst.msk [vmem:[#allocation5 + $0x30] sm:$0xff] %vm827_vm7, %v1320_v9  ;;  %2348 = vmatmul.msk.bf16.vlgmr.msrb.gmra.mxu3 %vm930_vm8, %v1550_v16 }
 0x312   : > { %v1269_v19 = vpop.permute.xlu1 %1268  ;;  %v1370_v21 = vld [vmem:[#allocation5 + $0x22] sm:$0xff] }
 0x313   : > { %v1267_v17 = vpop.permute.xlu0 %1266  ;;  %v1349_v23 = vld [vmem:[#allocation5 + $0x28] sm:$0xff]  ;;  %1288 = vst.msk [vmem:[#allocation5 + $0x40] sm:$0x3f] %vm1287_vm12, %v1269_v19  ;;  %v1375_v24 = vpack.c.bf16 %v1370_v21, %v1369_v20 }
 0x314   : > { %1286 = vst.msk [vmem:[#allocation5 + $0x38] sm:$0xff] %vm753_vm6, %v1267_v17  ;;  %v1353_v25 = vpack.c.bf16 %v1349_v23, %v1348_v22  ;;  %v1545_v26 = vld [vmem:[#allocation5 + $0x24] sm:$0xff]  ;;  %v1546_v27 = vld [vmem:[#allocation5 + $0x2c] sm:$0xff] }
 0x315   : > { %1341 = vst.msk [vmem:[#allocation5 + $0x38] sm:$0xff] %vm827_vm7, %v1322_v18  ;;  %2281 = vmatmul.msk.bf16.gmra.mxu1 %vm930_vm8, %v1375_v24  ;;  %v1551_v29 = vpack.c.bf16 %v1546_v27, %v1545_v26  ;;  %v1350_v31 = vld [vmem:[#allocation5 + $0x30] sm:$0x3] }
 0x316   : > { %2310 = vmatmul.msk.bf16.gmra.mxu2 %vm930_vm8, %v1353_v25  ;;  %v1371_v32 = vld [vmem:[#allocation5 + $0x2a] sm:$0xff]  ;;  %v1354_v34 = vpack.c.bf16 %v1350_v31, %v1350_v31 }
 0x31b   : > { %v1324_v28 = vpop.permute.xlu0 %1323 }
 0x31c   : > { %1343 = vst.msk [vmem:[#allocation5 + $0x40] sm:$0x3f] %vm1342_vm13, %v1324_v28  ;;  %v1372_v30 = vld [vmem:[#allocation5 + $0x32] sm:$0xff]  ;;  %v1373_v10 = vld [vmem:[#allocation5 + $0x3a] sm:$0x3] }
 0x31d   : > { %2349 = vmatmul.msk.bf16.gmra.mxu3 %vm930_vm8, %v1551_v29  ;;  %v1376_v33 = vpack.c.bf16 %v1372_v30, %v1371_v32  ;;  %v1547_v36 = vld [vmem:[#allocation5 + $0x34] sm:$0xff]  ;;  %v1377_v38 = vpack.c.bf16 %v1373_v10, %v1373_v10 }
 0x323   : > { %v1548_v35 = vld [vmem:[#allocation5 + $0x3c] sm:$0xff]  ;;  %v1549_v39 = vld [vmem:[#allocation5 + $0x44] sm:$0x3] }
 0x324   : > { %v1552_v37 = vpack.c.bf16 %v1548_v35, %v1547_v36  ;;  %v1553_v40 = vpack.c.bf16 %v1549_v39, %v1549_v39 }
 0x325   : > { %2282 = vmatmul.msk.bf16.gmra.mxu1 %vm930_vm8, %v1376_v33 }
 0x326   : > { %2311 = vmatmul.msk.bf16.gmra.mxu2 %vm930_vm8, %v1354_v34 }
 0x32d   : > { %2350 = vmatmul.msk.bf16.gmra.mxu3 %vm930_vm8, %v1552_v37 }
 0x335   : > { %2283 = vmatmul.msk.bf16.gmra.mxu1 %vm930_vm8, %v1377_v38 }
 0x33d   : > { %2351 = vmatmul.msk.bf16.gmra.mxu3 %vm930_vm8, %v1553_v40 }
 0x370   : > { %v1524_v41 = vpop.f32.mrf.mxu2 }
 0x378   : > { %v1526_v42 = vpop.f32.mrf.mxu2 }
 0x381   : > { %v1448_v43 = vpop.f32.mrf.mxu1 }
 0x382   : > { %v1525_v46 = vadd.f32 %v1524_v41, %v1448_v43 }
 0x388   : > { %v1529_v44 = vpop.f32.mrf.mxu2 }
 0x389   : > { %v1450_v45 = vpop.f32.mrf.mxu1 }
 0x38a   : > { %v1527_v53 = vadd.f32 %v1526_v42, %v1450_v45 }
 0x390   : > { %v1531_v48 = vpop.f32.mrf.mxu2  ;;  %v1624_v49 = vpop.f32.mrf.mxu3 }
 0x391   : > { %v1643_v15 = vadd.f32 %v1624_v49, %v1525_v46  ;;  %v1738_v49 = vld [vmem:[#allocation4 + $0x32] sm:$0x3] }
 0x392   : > { %v1453_v51 = vpop.f32.mrf.mxu1 }
 0x393   : > { %v1653_v50 = vadd.f32 %v2980_v47, %v1643_v15  ;;  %v1530_v61 = vadd.f32 %v1529_v44, %v1453_v51  ;;  %v2514_v51 = vld [vmem:[%s3111_s7 + $0x88] sm:$0xff] }
 0x394   : > { %1996 = vmatpush.bf16.msra.mxu3 %v2514_v51 }
 0x395   : > { %v1660_v52 = vmax.f32 %v1653_v50, 0.0  ;;  %v2502_v50 = vld [vmem:[%s3111_s7 + $0x28] sm:$0xff] }
 0x396   : > { %1916 = vmatpush.bf16.msra.mxu2 %v2502_v50 }
 0x397   : > { %1667 = vst.msk [vmem:[#allocation4] sm:$0xff] %vm500_vm2, %v1660_v52  ;;  %v2508_v52 = vld [vmem:[%s3111_s7 + $0x58] sm:$0xff] }
 0x398   : > { %v1626_v54 = vpop.f32.mrf.mxu3  ;;  %1855 = vmatpush.bf16.msra.mxu1 %v2508_v52 }
 0x399   : > { %v1644_v55 = vadd.f32 %v1626_v54, %v1527_v53  ;;  %v1534_v56 = vpop.f32.mrf.mxu2  ;;  %v2501_v53 = vld [vmem:[%s3111_s7 + $0x20] sm:$0xff] }
 0x39a   : > { %v1455_v58 = vpop.f32.mrf.mxu1  ;;  %v2513_v54 = vld [vmem:[%s3111_s7 + $0x80] sm:$0xff]  ;;  %1917 = vmatpush.bf16.msra.mxu2 %v2501_v53 }
 0x39b   : > { %v1654_v57 = vadd.f32 %v2980_v47, %v1644_v55  ;;  %v1532_v7 = vadd.f32 %v1531_v48, %v1455_v58  ;;  %1997 = vmatpush.bf16.msra.mxu3 %v2513_v54  ;;  %v2507_v55 = vld [vmem:[%s3111_s7 + $0x50] sm:$0xff]  ;;  %v2512_v58 = vld [vmem:[%s3111_s7 + $0x78] sm:$0xff] }
 0x39c   : > { %1856 = vmatpush.bf16.msra.mxu1 %v2507_v55 }
 0x39d   : > { %v1661_v59 = vmax.f32 %v1654_v57, 0.0  ;;  %v2499_v57 = vld [vmem:[%s3111_s7 + $0x10] sm:$0xff] }
 0x39e   : > { %v1676_v60 = vld [vmem:[#allocation4] sm:$0xff] }
 0x39f   : > { %1668 = vst.msk [vmem:[#allocation4 + $0x8] sm:$0xff] %vm500_vm2, %v1661_v59  ;;  %v2498_v59 = vld [vmem:[%s3111_s7 + $0x8] sm:$0xff]  ;;  %1998 = vmatpush.bf16.msra.mxu3 %v2512_v58 }
 0x3a0   : > { %v1629_v62 = vpop.f32.mrf.mxu3  ;;  %1683 = vst.msk [vmem:[#allocation5] sm:$0xff] %vm500_vm2, %v1676_v60  ;;  %v2506_v60 = vld [vmem:[%s3111_s7 + $0x48] sm:$0xff] }
 0x3a1   : > { %v1645_v63 = vadd.f32 %v1629_v62, %v1530_v61  ;;  %v1536_v0 = vpop.f32.mrf.mxu2  ;;  %1857 = vmatpush.bf16.msra.mxu1 %v2506_v60  ;;  %v2497_v61 = vld [vmem:[%s3111_s7] sm:$0xff] }
 0x3a2   : > { %v1458_v2 = vpop.f32.mrf.mxu1 }
 0x3a3   : > { %v1655_v1 = vadd.f32 %v2980_v47, %v1645_v63  ;;  %v1535_v19 = vadd.f32 %v1534_v56, %v1458_v2  ;;  %v2500_v56 = vld [vmem:[%s3111_s7 + $0x18] sm:$0xff]  ;;  %v2511_v63 = vld [vmem:[%s3111_s7 + $0x70] sm:$0xff]  ;;  %v2510_v2 = vld [vmem:[%s3111_s7 + $0x68] sm:$0xff] }
 0x3a4   : > { %1918 = vmatpush.bf16.msra.mxu2 %v2500_v56  ;;  %1999 = vmatpush.bf16.msra.mxu3 %v2511_v63 }
 0x3a5   : > { %v1662_v3 = vmax.f32 %v1655_v1, 0.0 }
 0x3a6   : > { %v1732_v4 = vld [vmem:[#allocation4 + $0x2] sm:$0xff] }
 0x3a7   : > { %v1690_v5 = vld [vmem:[#allocation4 + $0x1] sm:$0xff]  ;;  %1669 = vst.msk [vmem:[#allocation4 + $0x10] sm:$0xff] %vm500_vm2, %v1662_v3  ;;  %1746 = vrot.lane.b32.xlu0 %v1732_v4, %s2541_s26 }
 0x3a8   : > { %v1677_v6 = vld [vmem:[#allocation4 + $0x8] sm:$0xff]  ;;  %1704 = vrot.lane.b32.xlu1 %v1690_v5, %s2542_s27  ;;  %v1631_v8 = vpop.f32.mrf.mxu3  ;;  %1919 = vmatpush.bf16.msra.mxu2 %v2499_v57 }
 0x3a9   : > { %1684 = vst.msk [vmem:[#allocation5 + $0x8] sm:$0xff] %vm500_vm2, %v1677_v6  ;;  %v1646_v9 = vadd.f32 %v1631_v8, %v1532_v7  ;;  %v1539_v11 = vpop.f32.mrf.mxu2  ;;  %2000 = vmatpush.bf16.msra.mxu3 %v2510_v2  ;;  %v2504_v6 = vld [vmem:[%s3111_s7 + $0x38] sm:$0xff]  ;;  %v2503_v7 = vld [vmem:[%s3111_s7 + $0x30] sm:$0xff] }
 0x3aa   : > { %v1460_v13 = vpop.f32.mrf.mxu1 }
 0x3ab   : > { %v1656_v12 = vadd.f32 %v2980_v47, %v1646_v9  ;;  %v1537_v27 = vadd.f32 %v1536_v0, %v1460_v13  ;;  %v2505_v0 = vld [vmem:[%s3111_s7 + $0x40] sm:$0xff] }
 0x3ac   : > { %1920 = vmatpush.bf16.msra.mxu2 %v2498_v59  ;;  %1858 = vmatpush.bf16.msra.mxu1 %v2505_v0  ;;  %v2509_v9 = vld [vmem:[%s3111_s7 + $0x60] sm:$0xff] }
 0x3ad   : > { %v1663_v14 = vmax.f32 %v1656_v12, 0.0  ;;  %2001 = vmatpush.bf16.msra.mxu3 %v2509_v9 }
 0x3ae   : > { %v1678_v16 = vld [vmem:[#allocation4 + $0x10] sm:$0xff] }
 0x3af   : > { %v1691_v17 = vld [vmem:[#allocation4 + $0x9] sm:$0xff]  ;;  %1685 = vst.msk [vmem:[#allocation5 + $0x10] sm:$0xff] %vm500_vm2, %v1678_v16 }
 0x3b0   : > { %v1733_v18 = vld [vmem:[#allocation4 + $0xa] sm:$0xff]  ;;  %1706 = vrot.lane.b32.xlu2 %v1691_v17, %s2542_s27  ;;  %1670 = vst.msk [vmem:[#allocation4 + $0x18] sm:$0xff] %vm500_vm2, %v1663_v14  ;;  %v1634_v20 = vpop.f32.mrf.mxu3  ;;  %1921 = vmatpush.bf16.msra.mxu2 %v2497_v61 }
 0x3b1   : > { %1748 = vrot.lane.b32.xlu1 %v1733_v18, %s2541_s26  ;;  %v1647_v21 = vadd.f32 %v1634_v20, %v1535_v19  ;;  %v1541_v22 = vpop.f32.mrf.mxu2  ;;  %1859 = vmatpush.bf16.msra.mxu1 %v2504_v6 }
 0x3b2   : > { %v1463_v24 = vpop.f32.mrf.mxu1 }
 0x3b3   : > { %v1657_v23 = vadd.f32 %v2980_v47, %v1647_v21  ;;  %v1540_v36 = vadd.f32 %v1539_v11, %v1463_v24 }
 0x3b5   : > { %v1664_v25 = vmax.f32 %v1657_v23, 0.0  ;;  %1860 = vmatpush.bf16.msra.mxu1 %v2503_v7 }
 0x3b7   : > { %v1679_v26 = vld [vmem:[#allocation4 + $0x18] sm:$0xff]  ;;  %1671 = vst.msk [vmem:[#allocation4 + $0x20] sm:$0xff] %vm500_vm2, %v1664_v25 }
 0x3b8   : > { %v1692_v28 = vld [vmem:[#allocation4 + $0x11] sm:$0xff]  ;;  %1686 = vst.msk [vmem:[#allocation5 + $0x18] sm:$0xff] %vm500_vm2, %v1679_v26  ;;  %v1636_v29 = vpop.f32.mrf.mxu3 }
 0x3b9   : > { %1708 = vrot.lane.b32.xlu2 %v1692_v28, %s2542_s27  ;;  %v1648_v30 = vadd.f32 %v1636_v29, %v1537_v27  ;;  %v1734_v37 = vld [vmem:[#allocation4 + $0x12] sm:$0xff] }
 0x3ba   : > { %v1465_v32 = vpop.f32.mrf.mxu1 }
 0x3bb   : > { %v1658_v31 = vadd.f32 %v2980_v47, %v1648_v30 }
 0x3bd   : > { %v1665_v33 = vmax.f32 %v1658_v31, 0.0 }
 0x3be   : > { %v1680_v34 = vld [vmem:[#allocation4 + $0x20] sm:$0xff] }
 0x3bf   : > { %v1693_v35 = vld [vmem:[#allocation4 + $0x19] sm:$0xff]  ;;  %1687 = vst.msk [vmem:[#allocation5 + $0x20] sm:$0xff] %vm500_vm2, %v1680_v34 }
 0x3c0   : > { %1710 = vrot.lane.b32.xlu0 %v1693_v35, %s2542_s27  ;;  %1672 = vst.msk [vmem:[#allocation4 + $0x28] sm:$0xff] %vm500_vm2, %v1665_v33  ;;  %v1639_v10 = vpop.f32.mrf.mxu3  ;;  %v1735_v41 = vld [vmem:[#allocation4 + $0x1a] sm:$0xff] }
 0x3c1   : > { %1750 = vrot.lane.b32.xlu2 %v1734_v37, %s2541_s26  ;;  %v1649_v38 = vadd.f32 %v1639_v10, %v1540_v36 }
 0x3c3   : > { %v1659_v39 = vadd.f32 %v2980_v47, %v1649_v38 }
 0x3c5   : > { %v1666_v40 = vmax.f32 %v1659_v39, 0.0 }
 0x3c7   : > { %v1681_v42 = vld [vmem:[#allocation4 + $0x28] sm:$0xff]  ;;  %1673 = vst.msk [vmem:[#allocation4 + $0x30] sm:$0x3] %vm665_vm5, %v1666_v40 }
 0x3c8   : > { %1752 = vrot.lane.b32.xlu0 %v1735_v41, %s2541_s26  ;;  %v1694_v43 = vld [vmem:[#allocation4 + $0x21] sm:$0xff]  ;;  %1688 = vst.msk [vmem:[#allocation5 + $0x28] sm:$0xff] %vm500_vm2, %v1681_v42  ;;  %v1641_v44 = vpop.f32.mrf.mxu3 }
 0x3c9   : > { %1712 = vrot.lane.b32.xlu1 %v1694_v43, %s2542_s27  ;;  %v1736_v47 = vld [vmem:[#allocation4 + $0x22] sm:$0xff] }
 0x3ca   : > { %v2531_v40 = vld [vmem:[%s3112_s8] ss:$0 sm:$0xff] }
 0x3ce   : > { %v1682_v45 = vld [vmem:[#allocation4 + $0x30] sm:$0x3] }
 0x3cf   : > { %v1695_v46 = vld [vmem:[#allocation4 + $0x29] sm:$0xff]  ;;  %v1696_v48 = vld [vmem:[#allocation4 + $0x31] sm:$0x3]  ;;  %1689 = vst.msk [vmem:[#allocation5 + $0x30] sm:$0x3] %vm665_vm5, %v1682_v45 }
 0x3d0   : > { %1714 = vrot.lane.b32.xlu2 %v1695_v46, %s2542_s27  ;;  %1716 = vrot.lane.b32.xlu0 %v1696_v48, %s2542_s27  ;;  %v1737_v15 = vld [vmem:[#allocation4 + $0x2a] sm:$0xff] }
 0x3d1   : > { %1754 = vrot.lane.b32.xlu1 %v1736_v47, %s2541_s26 }
 0x3d8   : > { %1758 = vrot.lane.b32.xlu2 %v1738_v49, %s2541_s26 }
 0x3d9   : > { %1756 = vrot.lane.b32.xlu1 %v1737_v15, %s2541_s26 }
 0x40a   : > { %v1707_v62 = vpop.permute.xlu2 %1706 }
 0x40b   : > { %1726 = vst.msk [vmem:[#allocation5 + $0x8] sm:$0xff] %vm753_vm6, %v1707_v62 }
 0x413   : > { %v1709_v1 = vpop.permute.xlu2 %1708 }
 0x414   : > { %1727 = vst.msk [vmem:[#allocation5 + $0x10] sm:$0xff] %vm753_vm6, %v1709_v1 }
 0x419   : > { %v1747_v3 = vpop.permute.xlu0 %1746 }
 0x41a   : > { %v1705_v4 = vpop.permute.xlu1 %1704 }
 0x41b   : > { %v1751_v5 = vpop.permute.xlu2 %1750  ;;  %1725 = vst.msk [vmem:[#allocation5] sm:$0xff] %vm753_vm6, %v1705_v4 }
 0x41c   : > { %1769 = vst.msk [vmem:[#allocation5 + $0x10] sm:$0xff] %vm827_vm7, %v1751_v5 }
 0x41d   : > { %1767 = vst.msk [vmem:[#allocation5] sm:$0xff] %vm827_vm7, %v1747_v3 }
 0x423   : > { %v1749_v8 = vpop.permute.xlu1 %1748  ;;  %v1776_v19 = vld [vmem:[#allocation5 + $0x10] sm:$0xff] }
 0x424   : > { %1768 = vst.msk [vmem:[#allocation5 + $0x8] sm:$0xff] %vm827_vm7, %v1749_v8  ;;  %v1774_v12 = vld [vmem:[#allocation5] sm:$0xff] }
 0x42a   : > { %v1715_v11 = vpop.permute.xlu2 %1714 }
 0x42b   : > { %v1775_v13 = vld [vmem:[#allocation5 + $0x8] sm:$0xff]  ;;  %1730 = vst.msk [vmem:[#allocation5 + $0x28] sm:$0xff] %vm753_vm6, %v1715_v11 }
 0x42c   : > { %v1778_v14 = vpack.c.bf16 %v1775_v13, %v1774_v12  ;;  %v1792_v21 = vld [vmem:[#allocation5 + $0xa] sm:$0xff] }
 0x42e   : > { %2414 = vmatmul.msk.bf16.vlgmr.msra.gmra.mxu2 %vm930_vm8, %v1778_v14 }
 0x432   : > { %v1711_v16 = vpop.permute.xlu0 %1710  ;;  %v1759_v24 = vpop.permute.xlu2 %1758 }
 0x433   : > { %1728 = vst.msk [vmem:[#allocation5 + $0x18] sm:$0xff] %vm753_vm6, %v1711_v16 }
 0x43a   : > { %v1753_v17 = vpop.permute.xlu0 %1752 }
 0x43b   : > { %1770 = vst.msk [vmem:[#allocation5 + $0x18] sm:$0xff] %vm827_vm7, %v1753_v17  ;;  %v1713_v18 = vpop.permute.xlu1 %1712 }
 0x43c   : > { %1729 = vst.msk [vmem:[#allocation5 + $0x20] sm:$0xff] %vm753_vm6, %v1713_v18 }
 0x442   : > { %v1717_v20 = vpop.permute.xlu0 %1716  ;;  %v1793_v22 = vld [vmem:[#allocation5 + $0x12] sm:$0xff] }
 0x443   : > { %v1777_v23 = vld [vmem:[#allocation5 + $0x18] sm:$0x3f]  ;;  %1731 = vst.msk [vmem:[#allocation5 + $0x30] sm:$0x3] %vm765_vm9, %v1717_v20  ;;  %v1755_v25 = vpop.permute.xlu1 %1754  ;;  %v1796_v26 = vpack.c.bf16 %v1793_v22, %v1792_v21 }
 0x444   : > { %v1779_v27 = vpack.c.bf16 %v1777_v23, %v1776_v19  ;;  %1771 = vst.msk [vmem:[#allocation5 + $0x20] sm:$0xff] %vm827_vm7, %v1755_v25  ;;  %v1933_v29 = vld [vmem:[#allocation5 + $0x14] sm:$0xff] }
 0x445   : > { %2388 = vmatmul.msk.bf16.vlgmr.msra.gmra.mxu1 %vm930_vm8, %v1796_v26  ;;  %1773 = vst.msk [vmem:[#allocation5 + $0x30] sm:$0x3] %vm839_vm10, %v1759_v24 }
 0x446   : > { %2415 = vmatmul.msk.bf16.gmra.mxu2 %vm930_vm8, %v1779_v27 }
 0x44b   : > { %v1757_v28 = vpop.permute.xlu1 %1756  ;;  %v1934_v30 = vld [vmem:[#allocation5 + $0x1c] sm:$0xff] }
 0x44c   : > { %1772 = vst.msk [vmem:[#allocation5 + $0x28] sm:$0xff] %vm827_vm7, %v1757_v28  ;;  %v1937_v31 = vpack.c.bf16 %v1934_v30, %v1933_v29  ;;  %v1794_v32 = vld [vmem:[#allocation5 + $0x1a] sm:$0xff]  ;;  %v1795_v33 = vld [vmem:[#allocation5 + $0x22] sm:$0x3f] }
 0x44d   : > { %v1797_v34 = vpack.c.bf16 %v1795_v33, %v1794_v32 }
 0x44e   : > { %2452 = vmatmul.msk.bf16.vlgmr.msra.gmra.mxu3 %vm930_vm8, %v1937_v31 }
 0x453   : > { %v1935_v35 = vld [vmem:[#allocation5 + $0x24] sm:$0xff]  ;;  %v1936_v36 = vld [vmem:[#allocation5 + $0x2c] sm:$0x3f] }
 0x454   : > { %v1938_v37 = vpack.c.bf16 %v1936_v36, %v1935_v35 }
 0x455   : > { %2389 = vmatmul.msk.bf16.gmra.mxu1 %vm930_vm8, %v1797_v34 }
 0x45e   : > { %2453 = vmatmul.msk.bf16.gmra.mxu3 %vm930_vm8, %v1938_v37 }
 0x4b1   : > { %v1923_v38 = vpop.f32.mrf.mxu2 }
 0x4b9   : > { %v1925_v45 = vpop.f32.mrf.mxu2 }
 0x4c2   : > { %v1862_v10 = vpop.f32.mrf.mxu1 }
 0x4c3   : > { %v1924_v39 = vadd.f32 %v1923_v38, %v1862_v10 }
 0x4c9   : > { %v1928_v52 = vpop.f32.mrf.mxu2 }
 0x4ca   : > { %v1864_v41 = vpop.f32.mrf.mxu1 }
 0x4cb   : > { %v1926_v48 = vadd.f32 %v1925_v45, %v1864_v41 }
 0x4d1   : > { %v2003_v42 = vpop.f32.mrf.mxu3  ;;  %v1930_v61 = vpop.f32.mrf.mxu2 }
 0x4d2   : > { %v2013_v43 = vadd.f32 %v2003_v42, %v1924_v39  ;;  %v1867_v50 = vpop.f32.mrf.mxu1 }
 0x4d3   : > { %v1929_v54 = vadd.f32 %v1928_v52, %v1867_v50 }
 0x4d4   : > { %v2020_v44 = vadd.f32 %v2531_v40, %v2013_v43 }
 0x4d6   : > { %v2024_v46 = vmax.f32 %v2020_v44, 0.0 }
 0x4d8   : > { %v2028_v47 = vpack.c.bf16 %v2024_v46, %v2024_v46 }
 0x4d9   : > { %v2005_v49 = vpop.f32.mrf.mxu3 }
 0x4da   : > { %2033 = vst.msk [vmem:[%s332_s20] sm:$0xf] %vm2032_vm14, %v2028_v47  ;;  %v2014_v15 = vadd.f32 %v2005_v49, %v1926_v48  ;;  %v1869_v59 = vpop.f32.mrf.mxu1 }
 0x4db   : > { %v1931_v62 = vadd.f32 %v1930_v61, %v1869_v59 }
 0x4dc   : > { %v2021_v51 = vadd.f32 %v2531_v40, %v2014_v15 }
 0x4de   : > { %v2025_v53 = vmax.f32 %v2021_v51, 0.0 }
 0x4e0   : > { %v2029_v55 = vpack.c.bf16 %v2025_v53, %v2025_v53 }
 0x4e1   : > { %v2008_v56 = vpop.f32.mrf.mxu3 }
 0x4e2   : > { %2034 = vst.msk [vmem:[%s332_s20 + $0x4] sm:$0xf] %vm2032_vm14, %v2029_v55  ;;  %v2015_v57 = vadd.f32 %v2008_v56, %v1929_v54 }
 0x4e4   : > { %v2022_v58 = vadd.f32 %v2531_v40, %v2015_v57 }
 0x4e6   : > { %v2026_v60 = vmax.f32 %v2022_v58, 0.0 }
 0x4e8   : > { %v2030_v63 = vpack.c.bf16 %v2026_v60, %v2026_v60 }
 0x4e9   : > { %v2010_v0 = vpop.f32.mrf.mxu3 }
 0x4ea   : > { %2035 = vst.msk [vmem:[%s332_s20 + $0x8] sm:$0xf] %vm2032_vm14, %v2030_v63  ;;  %v2016_v1 = vadd.f32 %v2010_v0, %v1931_v62 }
 0x4ec   : > { %v2023_v2 = vadd.f32 %v2531_v40, %v2016_v1 }
 0x4ee   : > { %v2027_v3 = vmax.f32 %v2023_v2, 0.0 }
 0x4f0   : > { %v2031_v4 = vpack.c.bf16 %v2027_v3, %v2027_v3 }
 0x4f2   : > { %2037 = vst.msk [vmem:[%s332_s20 + $0xc] sm:$0x7] %vm2036_vm15, %v2031_v4 }
 0x4f3 PF: > { %s19_s30 = sadd.s32 1, %s2538_s30  }
 0x4f4   : > { %p16_p4 = scmp.ge.s32.totalorder %s19_s30, 4  }
 0x4f6   :  { %18 = sbr.rel (!%p16_p4) target bundleno = 1 (0x1), region = 93 }

</bundles_post_ra>
